<compile_context>
chip_gen: v5e
topology: v5e:2x2
jax: 0.10.0
libtpu: 0.0.40
codegen_flags: <defaults>
</compile_context>

<pallas_src>
import jax
import jax.numpy as jnp
from jax.experimental import pallas as pl
from jax.experimental.pallas import tpu as pltpu

# ----------------------------- configuration ------------------------------
B = 2          # batch (number of prompts)
S = 8          # padded sequence length
D = 32         # hidden size
H = 4          # attention heads
HD = D // H    # head dim
F = 64         # MLP intermediate size
P = 16         # text projection dim
VOCAB = 64
EOS_ID = VOCAB - 1
N_LAYERS = 2
LN_EPS = 1e-5
BS = B * S


# ------------------------------ fused kernel -------------------------------
def clip_text_kernel(eos_ref, x_ref, bias_ref,
                     ln1g_ref, ln1b_ref, wqkv_ref, bqkv_ref, wo_ref, bo_ref,
                     ln2g_ref, ln2b_ref, w1_ref, b1_ref, w2_ref, b2_ref,
                     lnfg_ref, lnfb_ref, wproj_ref, o_ref):
    """Entire CLIP text tower for the whole batch in one kernel invocation."""
    x = x_ref[...].astype(jnp.float32)            # (BS, D) activation slab
    attn_bias = bias_ref[...]                     # (BS, BS) additive mask, loaded once
    scale = HD ** -0.5

    def layer_norm(v, g, b):
        mu = jnp.mean(v, axis=-1, keepdims=True)
        var = jnp.mean((v - mu) ** 2, axis=-1, keepdims=True)
        return (v - mu) * jax.lax.rsqrt(var + LN_EPS) * g + b

    # Statically unrolled layer loop (N_LAYERS is tiny); all stacked weights
    # are VMEM-resident for the whole call, so there is no per-layer traffic.
    for l in range(N_LAYERS):
        # ---- LayerNorm 1 + fused QKV projection (one MXU push) ----
        h1 = layer_norm(x, ln1g_ref[l], ln1b_ref[l])                      # (BS, D)
        qkv = jnp.dot(h1, wqkv_ref[l],
                      preferred_element_type=jnp.float32) + bqkv_ref[l]   # (BS, 3D)
        q = qkv[:, 0 * D:1 * D] * scale
        k = qkv[:, 1 * D:2 * D]
        v = qkv[:, 2 * D:3 * D]

        # ---- multi-head causal attention over the whole batch at once ----
        wo_l = wo_ref[l]                                                  # (D, D)
        attn = jnp.zeros((BS, D), jnp.float32)
        for hh in range(H):
            lo = hh * HD
            qh = q[:, lo:lo + HD]
            kh = k[:, lo:lo + HD]
            vh = v[:, lo:lo + HD]
            # q @ k^T via dot_general dimension numbers (no explicit transpose)
            sc = jax.lax.dot_general(
                qh, kh, (((1,), (1,)), ((), ())),
                preferred_element_type=jnp.float32) + attn_bias           # (BS, BS)
            sc = sc - jnp.max(sc, axis=-1, keepdims=True)
            p = jnp.exp(sc)
            p = p * pl.reciprocal(jnp.sum(p, axis=-1, keepdims=True), approx=True)
            ctx = jnp.dot(p, vh, preferred_element_type=jnp.float32)      # (BS, HD)
            # Fold the output projection into the head loop: no concatenate.
            attn = attn + jnp.dot(ctx, wo_l[lo:lo + HD, :],
                                  preferred_element_type=jnp.float32)
        x = x + attn + bo_ref[l]                                          # residual 1

        # ---- LayerNorm 2 + MLP ----
        h2 = layer_norm(x, ln2g_ref[l], ln2b_ref[l])
        f = jnp.dot(h2, w1_ref[l], preferred_element_type=jnp.float32) + b1_ref[l]
        # TODO(synk): HF CLIP-H uses exact erf GELU; tanh approximation (Mosaic-safe).
        f = 0.5 * f * (1.0 + jnp.tanh(0.7978845608028654 * (f + 0.044715 * f * f * f)))
        mlp = jnp.dot(f, w2_ref[l], preferred_element_type=jnp.float32) + b2_ref[l]
        x = x + mlp                                                       # residual 2

    # ---- EOS pooling inside the kernel (eos indices live in SMEM) ----
    # Build a (B, BS) one-hot selection matrix and gather via one matmul.
    row = jax.lax.broadcasted_iota(jnp.int32, (B, BS), 0)
    col = jax.lax.broadcasted_iota(jnp.int32, (B, BS), 1)
    sel = jnp.zeros((B, BS), jnp.float32)
    for b in range(B):
        tgt = b * S + eos_ref[b]                      # scalar read from SMEM
        sel = sel + jnp.where((row == b) & (col == tgt), 1.0, 0.0)
    pooled = jnp.dot(sel, x, preferred_element_type=jnp.float32)          # (B, D)

    # ---- final LayerNorm + text_projection + L2 normalize ----
    hf = layer_norm(pooled, lnfg_ref[...], lnfb_ref[...])
    e = jnp.dot(hf, wproj_ref[...], preferred_element_type=jnp.float32)   # (B, P)
    inv = jax.lax.rsqrt(jnp.sum(e * e, axis=-1, keepdims=True))
    o_ref[...] = (e * inv).astype(o_ref.dtype)


def run_clip_text(eos_idx, x0, attn_bias, p):
    smem = pl.BlockSpec(memory_space=pltpu.MemorySpace.SMEM)
    in_specs = [smem] + [pl.BlockSpec(memory_space=pltpu.MemorySpace.VMEM)
                         for _ in range(17)]
    return pl.pallas_call(
        clip_text_kernel,
        out_shape=jax.ShapeDtypeStruct((B, P), jnp.float32),
        in_specs=in_specs,
        out_specs=pl.BlockSpec(memory_space=pltpu.MemorySpace.VMEM),
    )(eos_idx, x0, attn_bias,
      p['ln1g'], p['ln1b'], p['wqkv'], p['bqkv'], p['wo'], p['bo'],
      p['ln2g'], p['ln2b'], p['w1'], p['b1'], p['w2'], p['b2'],
      p['lnfg'], p['lnfb'], p['wproj'])


# ------------------------------ param setup --------------------------------
def init_params(key):
    std = 0.02
    ks = jax.random.split(key, 7)

    def nrm(k, shape):
        return (std * jax.random.normal(k, shape)).astype(jnp.float32)

    return {
        'tok_emb': nrm(ks[0], (VOCAB, D)),
        'pos_emb': nrm(ks[1], (S, D)),
        # stacked per-layer weights (leading axis = layer index)
        'ln1g': jnp.ones((N_LAYERS, 1, D), jnp.float32),
        'ln1b': jnp.zeros((N_LAYERS, 1, D), jnp.float32),
        'wqkv': nrm(ks[2], (N_LAYERS, D, 3 * D)),       # fused Q|K|V
        'bqkv': jnp.zeros((N_LAYERS, 1, 3 * D), jnp.float32),
        'wo': nrm(ks[3], (N_LAYERS, D, D)),
        'bo': jnp.zeros((N_LAYERS, 1, D), jnp.float32),
        'ln2g': jnp.ones((N_LAYERS, 1, D), jnp.float32),
        'ln2b': jnp.zeros((N_LAYERS, 1, D), jnp.float32),
        'w1': nrm(ks[4], (N_LAYERS, D, F)),
        'b1': jnp.zeros((N_LAYERS, 1, F), jnp.float32),
        'w2': nrm(ks[5], (N_LAYERS, F, D)),
        'b2': jnp.zeros((N_LAYERS, 1, D), jnp.float32),
        # final head
        'lnfg': jnp.ones((1, D), jnp.float32),
        'lnfb': jnp.zeros((1, D), jnp.float32),
        'wproj': nrm(ks[6], (D, P)),                    # text_projection (no bias)
    }


# ------------------------------ forward pass --------------------------------
@jax.jit
def clip_text_features(input_ids, params):
    """Equivalent of get_text_features(**inputs) followed by L2 normalization."""
    # Embedding lookup + position embedding (glue; gather stays in plain JAX).
    x = params['tok_emb'][input_ids] + params['pos_emb'][None, :, :]      # (B,S,D)
    x0 = x.reshape(BS, D).astype(jnp.float32)

    # HF CLIP pools at the position of the EOS token.
    eos_idx = jnp.argmax((input_ids == EOS_ID).astype(jnp.int32), axis=-1)
    eos_idx = eos_idx.astype(jnp.int32)                                   # (B,)

    # Additive block-diagonal causal bias (same batch element AND j <= i),
    # built once outside the layer loop and passed into the kernel.
    idx = jnp.arange(BS, dtype=jnp.int32)
    same_b = (idx[:, None] // S) == (idx[None, :] // S)
    causal = idx[None, :] <= idx[:, None]
    attn_bias = jnp.where(same_b & causal, 0.0, -1e9).astype(jnp.float32)

    return run_clip_text(eos_idx, x0, attn_bias, params)


# ---------------------------------- main ------------------------------------
if __name__ == "__main__":
    key = jax.random.PRNGKey(0)
    pkey, ikey = jax.random.split(key)
    params = init_params(pkey)

    # Deterministic synthetic "tokenized prompts": ids in [1, VOCAB-2], with
    # the last position set to EOS_ID (= eos_token_id, used for pooling).
    input_ids = jax.random.randint(ikey, (B, S), 1, VOCAB - 1, dtype=jnp.int32)
    input_ids = input_ids.at[:, -1].set(EOS_ID)

    text_embeds = clip_text_features(input_ids, params)
    text_embeds = jax.block_until_ready(text_embeds)

    assert text_embeds.shape == (B, P)
    # embeddings must be unit-norm after the in-kernel L2 normalization
    norms = jnp.linalg.norm(text_embeds, axis=-1)
    assert bool(jnp.all(jnp.abs(norms - 1.0) < 1e-4))
    print("KERNEL_OK")
</pallas_src>

<mosaic_0001>
module attributes {stable_mosaic.version = 11 : i64} {
  func.func @clip_text_kernel(%arg0: memref<2xi32, #tpu.memory_space<smem>>, %arg1: memref<16x32xf32, #tpu.memory_space<vmem>>, %arg2: memref<16x16xf32, #tpu.memory_space<vmem>>, %arg3: memref<2x1x32xf32, #tpu.memory_space<vmem>>, %arg4: memref<2x1x32xf32, #tpu.memory_space<vmem>>, %arg5: memref<2x32x96xf32, #tpu.memory_space<vmem>>, %arg6: memref<2x1x96xf32, #tpu.memory_space<vmem>>, %arg7: memref<2x32x32xf32, #tpu.memory_space<vmem>>, %arg8: memref<2x1x32xf32, #tpu.memory_space<vmem>>, %arg9: memref<2x1x32xf32, #tpu.memory_space<vmem>>, %arg10: memref<2x1x32xf32, #tpu.memory_space<vmem>>, %arg11: memref<2x32x64xf32, #tpu.memory_space<vmem>>, %arg12: memref<2x1x64xf32, #tpu.memory_space<vmem>>, %arg13: memref<2x64x32xf32, #tpu.memory_space<vmem>>, %arg14: memref<2x1x32xf32, #tpu.memory_space<vmem>>, %arg15: memref<1x32xf32, #tpu.memory_space<vmem>>, %arg16: memref<1x32xf32, #tpu.memory_space<vmem>>, %arg17: memref<32x16xf32, #tpu.memory_space<vmem>>, %arg18: memref<2x16xf32, #tpu.memory_space<vmem>>) attributes {dimension_semantics = [], scalar_prefetch = 0 : i64, scratch_operands = 0 : i64, tpu.core_type = #tpu.core_type<tc>} {
    %c0 = arith.constant 0 : index
    %c0_0 = arith.constant 0 : index
    %0 = vector.load %arg1[%c0, %c0_0] : memref<16x32xf32, #tpu.memory_space<vmem>>, vector<16x32xf32>
    %c0_1 = arith.constant 0 : index
    %c0_2 = arith.constant 0 : index
    %1 = vector.load %arg2[%c0_1, %c0_2] : memref<16x16xf32, #tpu.memory_space<vmem>>, vector<16x16xf32>
    %c0_3 = arith.constant 0 : index
    %c0_4 = arith.constant 0 : index
    %c0_5 = arith.constant 0 : index
    %2 = vector.load %arg3[%c0_3, %c0_4, %c0_5] : memref<2x1x32xf32, #tpu.memory_space<vmem>>, vector<1x1x32xf32>
    %3 = vector.shape_cast %2 : vector<1x1x32xf32> to vector<1x32xf32>
    %c0_6 = arith.constant 0 : index
    %c0_7 = arith.constant 0 : index
    %c0_8 = arith.constant 0 : index
    %4 = vector.load %arg4[%c0_6, %c0_7, %c0_8] : memref<2x1x32xf32, #tpu.memory_space<vmem>>, vector<1x1x32xf32>
    %5 = vector.shape_cast %4 : vector<1x1x32xf32> to vector<1x32xf32>
    %cst = arith.constant dense<0.000000e+00> : vector<16xf32>
    %6 = vector.multi_reduction <add>, %0, %cst [1] : vector<16x32xf32> to vector<16xf32>
    %7 = vector.shape_cast %6 : vector<16xf32> to vector<16x1xf32>
    %cst_9 = arith.constant 3.200000e+01 : f32
    %8 = vector.broadcast %cst_9 : f32 to vector<16x1xf32>
    %9 = arith.divf %7, %8 : vector<16x1xf32>
    %10 = vector.broadcast %9 : vector<16x1xf32> to vector<16x32xf32>
    %11 = arith.subf %0, %10 : vector<16x32xf32>
    %12 = arith.mulf %11, %11 : vector<16x32xf32>
    %cst_10 = arith.constant dense<0.000000e+00> : vector<16xf32>
    %13 = vector.multi_reduction <add>, %12, %cst_10 [1] : vector<16x32xf32> to vector<16xf32>
    %14 = vector.shape_cast %13 : vector<16xf32> to vector<16x1xf32>
    %cst_11 = arith.constant 3.200000e+01 : f32
    %15 = vector.broadcast %cst_11 : f32 to vector<16x1xf32>
    %16 = arith.divf %14, %15 : vector<16x1xf32>
    %17 = vector.broadcast %9 : vector<16x1xf32> to vector<16x32xf32>
    %18 = arith.subf %0, %17 : vector<16x32xf32>
    %cst_12 = arith.constant 9.99999974E-6 : f32
    %19 = vector.broadcast %cst_12 : f32 to vector<16x1xf32>
    %20 = arith.addf %16, %19 : vector<16x1xf32>
    %21 = math.rsqrt %20 : vector<16x1xf32>
    %22 = vector.broadcast %21 : vector<16x1xf32> to vector<16x32xf32>
    %23 = arith.mulf %18, %22 : vector<16x32xf32>
    %24 = vector.broadcast %3 : vector<1x32xf32> to vector<16x32xf32>
    %25 = arith.mulf %23, %24 : vector<16x32xf32>
    %26 = vector.broadcast %5 : vector<1x32xf32> to vector<16x32xf32>
    %27 = arith.addf %25, %26 : vector<16x32xf32>
    %c0_13 = arith.constant 0 : index
    %c0_14 = arith.constant 0 : index
    %c0_15 = arith.constant 0 : index
    %28 = vector.load %arg5[%c0_13, %c0_14, %c0_15] : memref<2x32x96xf32, #tpu.memory_space<vmem>>, vector<1x32x96xf32>
    %29 = vector.shape_cast %28 : vector<1x32x96xf32> to vector<32x96xf32>
    %cst_16 = arith.constant dense<0.000000e+00> : vector<16x96xf32>
    %30 = tpu.matmul %27, %29, %cst_16 {dimension_numbers = #tpu.dot_dimension_numbers<[1], [0], [0], [1], [0, 0, 1, 1], [], []>} : vector<16x32xf32>, vector<32x96xf32>, vector<16x96xf32> -> vector<16x96xf32>
    %c0_17 = arith.constant 0 : index
    %c0_18 = arith.constant 0 : index
    %c0_19 = arith.constant 0 : index
    %31 = vector.load %arg6[%c0_17, %c0_18, %c0_19] : memref<2x1x96xf32, #tpu.memory_space<vmem>>, vector<1x1x96xf32>
    %32 = vector.shape_cast %31 : vector<1x1x96xf32> to vector<1x96xf32>
    %33 = vector.broadcast %32 : vector<1x96xf32> to vector<16x96xf32>
    %34 = arith.addf %30, %33 : vector<16x96xf32>
    %35 = vector.extract_strided_slice %34 {offsets = [0, 0], sizes = [16, 32], strides = [1, 1]} : vector<16x96xf32> to vector<16x32xf32>
    %cst_20 = arith.constant 0.353553385 : f32
    %36 = vector.broadcast %cst_20 : f32 to vector<16x32xf32>
    %37 = arith.mulf %35, %36 : vector<16x32xf32>
    %38 = vector.extract_strided_slice %34 {offsets = [0, 32], sizes = [16, 32], strides = [1, 1]} : vector<16x96xf32> to vector<16x32xf32>
    %39 = vector.extract_strided_slice %34 {offsets = [0, 64], sizes = [16, 32], strides = [1, 1]} : vector<16x96xf32> to vector<16x32xf32>
    %c0_21 = arith.constant 0 : index
    %c0_22 = arith.constant 0 : index
    %c0_23 = arith.constant 0 : index
    %40 = vector.load %arg7[%c0_21, %c0_22, %c0_23] : memref<2x32x32xf32, #tpu.memory_space<vmem>>, vector<1x32x32xf32>
    %41 = vector.shape_cast %40 : vector<1x32x32xf32> to vector<32x32xf32>
    %cst_24 = arith.constant 0.000000e+00 : f32
    %42 = vector.broadcast %cst_24 : f32 to vector<16x32xf32>
    %43 = vector.extract_strided_slice %37 {offsets = [0, 0], sizes = [16, 8], strides = [1, 1]} : vector<16x32xf32> to vector<16x8xf32>
    %44 = vector.extract_strided_slice %38 {offsets = [0, 0], sizes = [16, 8], strides = [1, 1]} : vector<16x32xf32> to vector<16x8xf32>
    %45 = vector.extract_strided_slice %39 {offsets = [0, 0], sizes = [16, 8], strides = [1, 1]} : vector<16x32xf32> to vector<16x8xf32>
    %cst_25 = arith.constant dense<0.000000e+00> : vector<16x16xf32>
    %46 = tpu.matmul %43, %44, %cst_25 {dimension_numbers = #tpu.dot_dimension_numbers<[1], [1], [0], [0], [0, 0, 1, 0], [], []>} : vector<16x8xf32>, vector<16x8xf32>, vector<16x16xf32> -> vector<16x16xf32>
    %47 = arith.addf %46, %1 : vector<16x16xf32>
    %cst_26 = arith.constant dense<0xFF800000> : vector<16xf32>
    %48 = vector.multi_reduction <maximumf>, %47, %cst_26 [1] : vector<16x16xf32> to vector<16xf32>
    %49 = vector.shape_cast %48 : vector<16xf32> to vector<16x1xf32>
    %50 = vector.broadcast %49 : vector<16x1xf32> to vector<16x16xf32>
    %51 = arith.subf %47, %50 : vector<16x16xf32>
    %52 = math.exp %51 : vector<16x16xf32>
    %cst_27 = arith.constant dense<0.000000e+00> : vector<16xf32>
    %53 = vector.multi_reduction <add>, %52, %cst_27 [1] : vector<16x16xf32> to vector<16xf32>
    %54 = vector.shape_cast %53 : vector<16xf32> to vector<16x1xf32>
    %55 = tpu.reciprocal %54 {approx = true} : vector<16x1xf32> -> vector<16x1xf32>
    %56 = vector.broadcast %55 : vector<16x1xf32> to vector<16x16xf32>
    %57 = arith.mulf %52, %56 : vector<16x16xf32>
    %cst_28 = arith.constant dense<0.000000e+00> : vector<16x8xf32>
    %58 = tpu.matmul %57, %45, %cst_28 {dimension_numbers = #tpu.dot_dimension_numbers<[1], [0], [0], [1], [0, 0, 1, 1], [], []>} : vector<16x16xf32>, vector<16x8xf32>, vector<16x8xf32> -> vector<16x8xf32>
    %59 = vector.extract_strided_slice %41 {offsets = [0, 0], sizes = [8, 32], strides = [1, 1]} : vector<32x32xf32> to vector<8x32xf32>
    %cst_29 = arith.constant dense<0.000000e+00> : vector<16x32xf32>
    %60 = tpu.matmul %58, %59, %cst_29 {dimension_numbers = #tpu.dot_dimension_numbers<[1], [0], [0], [1], [0, 0, 1, 1], [], []>} : vector<16x8xf32>, vector<8x32xf32>, vector<16x32xf32> -> vector<16x32xf32>
    %61 = arith.addf %42, %60 : vector<16x32xf32>
    %62 = vector.extract_strided_slice %37 {offsets = [0, 8], sizes = [16, 8], strides = [1, 1]} : vector<16x32xf32> to vector<16x8xf32>
    %63 = vector.extract_strided_slice %38 {offsets = [0, 8], sizes = [16, 8], strides = [1, 1]} : vector<16x32xf32> to vector<16x8xf32>
    %64 = vector.extract_strided_slice %39 {offsets = [0, 8], sizes = [16, 8], strides = [1, 1]} : vector<16x32xf32> to vector<16x8xf32>
    %cst_30 = arith.constant dense<0.000000e+00> : vector<16x16xf32>
    %65 = tpu.matmul %62, %63, %cst_30 {dimension_numbers = #tpu.dot_dimension_numbers<[1], [1], [0], [0], [0, 0, 1, 0], [], []>} : vector<16x8xf32>, vector<16x8xf32>, vector<16x16xf32> -> vector<16x16xf32>
    %66 = arith.addf %65, %1 : vector<16x16xf32>
    %cst_31 = arith.constant dense<0xFF800000> : vector<16xf32>
    %67 = vector.multi_reduction <maximumf>, %66, %cst_31 [1] : vector<16x16xf32> to vector<16xf32>
    %68 = vector.shape_cast %67 : vector<16xf32> to vector<16x1xf32>
    %69 = vector.broadcast %68 : vector<16x1xf32> to vector<16x16xf32>
    %70 = arith.subf %66, %69 : vector<16x16xf32>
    %71 = math.exp %70 : vector<16x16xf32>
    %cst_32 = arith.constant dense<0.000000e+00> : vector<16xf32>
    %72 = vector.multi_reduction <add>, %71, %cst_32 [1] : vector<16x16xf32> to vector<16xf32>
    %73 = vector.shape_cast %72 : vector<16xf32> to vector<16x1xf32>
    %74 = tpu.reciprocal %73 {approx = true} : vector<16x1xf32> -> vector<16x1xf32>
    %75 = vector.broadcast %74 : vector<16x1xf32> to vector<16x16xf32>
    %76 = arith.mulf %71, %75 : vector<16x16xf32>
    %cst_33 = arith.constant dense<0.000000e+00> : vector<16x8xf32>
    %77 = tpu.matmul %76, %64, %cst_33 {dimension_numbers = #tpu.dot_dimension_numbers<[1], [0], [0], [1], [0, 0, 1, 1], [], []>} : vector<16x16xf32>, vector<16x8xf32>, vector<16x8xf32> -> vector<16x8xf32>
    %78 = vector.extract_strided_slice %41 {offsets = [8, 0], sizes = [8, 32], strides = [1, 1]} : vector<32x32xf32> to vector<8x32xf32>
    %cst_34 = arith.constant dense<0.000000e+00> : vector<16x32xf32>
    %79 = tpu.matmul %77, %78, %cst_34 {dimension_numbers = #tpu.dot_dimension_numbers<[1], [0], [0], [1], [0, 0, 1, 1], [], []>} : vector<16x8xf32>, vector<8x32xf32>, vector<16x32xf32> -> vector<16x32xf32>
    %80 = arith.addf %61, %79 : vector<16x32xf32>
    %81 = vector.extract_strided_slice %37 {offsets = [0, 16], sizes = [16, 8], strides = [1, 1]} : vector<16x32xf32> to vector<16x8xf32>
    %82 = vector.extract_strided_slice %38 {offsets = [0, 16], sizes = [16, 8], strides = [1, 1]} : vector<16x32xf32> to vector<16x8xf32>
    %83 = vector.extract_strided_slice %39 {offsets = [0, 16], sizes = [16, 8], strides = [1, 1]} : vector<16x32xf32> to vector<16x8xf32>
    %cst_35 = arith.constant dense<0.000000e+00> : vector<16x16xf32>
    %84 = tpu.matmul %81, %82, %cst_35 {dimension_numbers = #tpu.dot_dimension_numbers<[1], [1], [0], [0], [0, 0, 1, 0], [], []>} : vector<16x8xf32>, vector<16x8xf32>, vector<16x16xf32> -> vector<16x16xf32>
    %85 = arith.addf %84, %1 : vector<16x16xf32>
    %cst_36 = arith.constant dense<0xFF800000> : vector<16xf32>
    %86 = vector.multi_reduction <maximumf>, %85, %cst_36 [1] : vector<16x16xf32> to vector<16xf32>
    %87 = vector.shape_cast %86 : vector<16xf32> to vector<16x1xf32>
    %88 = vector.broadcast %87 : vector<16x1xf32> to vector<16x16xf32>
    %89 = arith.subf %85, %88 : vector<16x16xf32>
    %90 = math.exp %89 : vector<16x16xf32>
    %cst_37 = arith.constant dense<0.000000e+00> : vector<16xf32>
    %91 = vector.multi_reduction <add>, %90, %cst_37 [1] : vector<16x16xf32> to vector<16xf32>
    %92 = vector.shape_cast %91 : vector<16xf32> to vector<16x1xf32>
    %93 = tpu.reciprocal %92 {approx = true} : vector<16x1xf32> -> vector<16x1xf32>
    %94 = vector.broadcast %93 : vector<16x1xf32> to vector<16x16xf32>
    %95 = arith.mulf %90, %94 : vector<16x16xf32>
    %cst_38 = arith.constant dense<0.000000e+00> : vector<16x8xf32>
    %96 = tpu.matmul %95, %83, %cst_38 {dimension_numbers = #tpu.dot_dimension_numbers<[1], [0], [0], [1], [0, 0, 1, 1], [], []>} : vector<16x16xf32>, vector<16x8xf32>, vector<16x8xf32> -> vector<16x8xf32>
    %97 = vector.extract_strided_slice %41 {offsets = [16, 0], sizes = [8, 32], strides = [1, 1]} : vector<32x32xf32> to vector<8x32xf32>
    %cst_39 = arith.constant dense<0.000000e+00> : vector<16x32xf32>
    %98 = tpu.matmul %96, %97, %cst_39 {dimension_numbers = #tpu.dot_dimension_numbers<[1], [0], [0], [1], [0, 0, 1, 1], [], []>} : vector<16x8xf32>, vector<8x32xf32>, vector<16x32xf32> -> vector<16x32xf32>
    %99 = arith.addf %80, %98 : vector<16x32xf32>
    %100 = vector.extract_strided_slice %37 {offsets = [0, 24], sizes = [16, 8], strides = [1, 1]} : vector<16x32xf32> to vector<16x8xf32>
    %101 = vector.extract_strided_slice %38 {offsets = [0, 24], sizes = [16, 8], strides = [1, 1]} : vector<16x32xf32> to vector<16x8xf32>
    %102 = vector.extract_strided_slice %39 {offsets = [0, 24], sizes = [16, 8], strides = [1, 1]} : vector<16x32xf32> to vector<16x8xf32>
    %cst_40 = arith.constant dense<0.000000e+00> : vector<16x16xf32>
    %103 = tpu.matmul %100, %101, %cst_40 {dimension_numbers = #tpu.dot_dimension_numbers<[1], [1], [0], [0], [0, 0, 1, 0], [], []>} : vector<16x8xf32>, vector<16x8xf32>, vector<16x16xf32> -> vector<16x16xf32>
    %104 = arith.addf %103, %1 : vector<16x16xf32>
    %cst_41 = arith.constant dense<0xFF800000> : vector<16xf32>
    %105 = vector.multi_reduction <maximumf>, %104, %cst_41 [1] : vector<16x16xf32> to vector<16xf32>
    %106 = vector.shape_cast %105 : vector<16xf32> to vector<16x1xf32>
    %107 = vector.broadcast %106 : vector<16x1xf32> to vector<16x16xf32>
    %108 = arith.subf %104, %107 : vector<16x16xf32>
    %109 = math.exp %108 : vector<16x16xf32>
    %cst_42 = arith.constant dense<0.000000e+00> : vector<16xf32>
    %110 = vector.multi_reduction <add>, %109, %cst_42 [1] : vector<16x16xf32> to vector<16xf32>
    %111 = vector.shape_cast %110 : vector<16xf32> to vector<16x1xf32>
    %112 = tpu.reciprocal %111 {approx = true} : vector<16x1xf32> -> vector<16x1xf32>
    %113 = vector.broadcast %112 : vector<16x1xf32> to vector<16x16xf32>
    %114 = arith.mulf %109, %113 : vector<16x16xf32>
    %cst_43 = arith.constant dense<0.000000e+00> : vector<16x8xf32>
    %115 = tpu.matmul %114, %102, %cst_43 {dimension_numbers = #tpu.dot_dimension_numbers<[1], [0], [0], [1], [0, 0, 1, 1], [], []>} : vector<16x16xf32>, vector<16x8xf32>, vector<16x8xf32> -> vector<16x8xf32>
    %116 = vector.extract_strided_slice %41 {offsets = [24, 0], sizes = [8, 32], strides = [1, 1]} : vector<32x32xf32> to vector<8x32xf32>
    %cst_44 = arith.constant dense<0.000000e+00> : vector<16x32xf32>
    %117 = tpu.matmul %115, %116, %cst_44 {dimension_numbers = #tpu.dot_dimension_numbers<[1], [0], [0], [1], [0, 0, 1, 1], [], []>} : vector<16x8xf32>, vector<8x32xf32>, vector<16x32xf32> -> vector<16x32xf32>
    %118 = arith.addf %99, %117 : vector<16x32xf32>
    %119 = arith.addf %0, %118 : vector<16x32xf32>
    %c0_45 = arith.constant 0 : index
    %c0_46 = arith.constant 0 : index
    %c0_47 = arith.constant 0 : index
    %120 = vector.load %arg8[%c0_45, %c0_46, %c0_47] : memref<2x1x32xf32, #tpu.memory_space<vmem>>, vector<1x1x32xf32>
    %121 = vector.shape_cast %120 : vector<1x1x32xf32> to vector<1x32xf32>
    %122 = vector.broadcast %121 : vector<1x32xf32> to vector<16x32xf32>
    %123 = arith.addf %119, %122 : vector<16x32xf32>
    %c0_48 = arith.constant 0 : index
    %c0_49 = arith.constant 0 : index
    %c0_50 = arith.constant 0 : index
    %124 = vector.load %arg9[%c0_48, %c0_49, %c0_50] : memref<2x1x32xf32, #tpu.memory_space<vmem>>, vector<1x1x32xf32>
    %125 = vector.shape_cast %124 : vector<1x1x32xf32> to vector<1x32xf32>
    %c0_51 = arith.constant 0 : index
    %c0_52 = arith.constant 0 : index
    %c0_53 = arith.constant 0 : index
    %126 = vector.load %arg10[%c0_51, %c0_52, %c0_53] : memref<2x1x32xf32, #tpu.memory_space<vmem>>, vector<1x1x32xf32>
    %127 = vector.shape_cast %126 : vector<1x1x32xf32> to vector<1x32xf32>
    %cst_54 = arith.constant dense<0.000000e+00> : vector<16xf32>
    %128 = vector.multi_reduction <add>, %123, %cst_54 [1] : vector<16x32xf32> to vector<16xf32>
    %129 = vector.shape_cast %128 : vector<16xf32> to vector<16x1xf32>
    %cst_55 = arith.constant 3.200000e+01 : f32
    %130 = vector.broadcast %cst_55 : f32 to vector<16x1xf32>
    %131 = arith.divf %129, %130 : vector<16x1xf32>
    %132 = vector.broadcast %131 : vector<16x1xf32> to vector<16x32xf32>
    %133 = arith.subf %123, %132 : vector<16x32xf32>
    %134 = arith.mulf %133, %133 : vector<16x32xf32>
    %cst_56 = arith.constant dense<0.000000e+00> : vector<16xf32>
    %135 = vector.multi_reduction <add>, %134, %cst_56 [1] : vector<16x32xf32> to vector<16xf32>
    %136 = vector.shape_cast %135 : vector<16xf32> to vector<16x1xf32>
    %cst_57 = arith.constant 3.200000e+01 : f32
    %137 = vector.broadcast %cst_57 : f32 to vector<16x1xf32>
    %138 = arith.divf %136, %137 : vector<16x1xf32>
    %139 = vector.broadcast %131 : vector<16x1xf32> to vector<16x32xf32>
    %140 = arith.subf %123, %139 : vector<16x32xf32>
    %cst_58 = arith.constant 9.99999974E-6 : f32
    %141 = vector.broadcast %cst_58 : f32 to vector<16x1xf32>
    %142 = arith.addf %138, %141 : vector<16x1xf32>
    %143 = math.rsqrt %142 : vector<16x1xf32>
    %144 = vector.broadcast %143 : vector<16x1xf32> to vector<16x32xf32>
    %145 = arith.mulf %140, %144 : vector<16x32xf32>
    %146 = vector.broadcast %125 : vector<1x32xf32> to vector<16x32xf32>
    %147 = arith.mulf %145, %146 : vector<16x32xf32>
    %148 = vector.broadcast %127 : vector<1x32xf32> to vector<16x32xf32>
    %149 = arith.addf %147, %148 : vector<16x32xf32>
    %c0_59 = arith.constant 0 : index
    %c0_60 = arith.constant 0 : index
    %c0_61 = arith.constant 0 : index
    %150 = vector.load %arg11[%c0_59, %c0_60, %c0_61] : memref<2x32x64xf32, #tpu.memory_space<vmem>>, vector<1x32x64xf32>
    %151 = vector.shape_cast %150 : vector<1x32x64xf32> to vector<32x64xf32>
    %cst_62 = arith.constant dense<0.000000e+00> : vector<16x64xf32>
    %152 = tpu.matmul %149, %151, %cst_62 {dimension_numbers = #tpu.dot_dimension_numbers<[1], [0], [0], [1], [0, 0, 1, 1], [], []>} : vector<16x32xf32>, vector<32x64xf32>, vector<16x64xf32> -> vector<16x64xf32>
    %c0_63 = arith.constant 0 : index
    %c0_64 = arith.constant 0 : index
    %c0_65 = arith.constant 0 : index
    %153 = vector.load %arg12[%c0_63, %c0_64, %c0_65] : memref<2x1x64xf32, #tpu.memory_space<vmem>>, vector<1x1x64xf32>
    %154 = vector.shape_cast %153 : vector<1x1x64xf32> to vector<1x64xf32>
    %155 = vector.broadcast %154 : vector<1x64xf32> to vector<16x64xf32>
    %156 = arith.addf %152, %155 : vector<16x64xf32>
    %cst_66 = arith.constant 5.000000e-01 : f32
    %157 = vector.broadcast %cst_66 : f32 to vector<16x64xf32>
    %158 = arith.mulf %157, %156 : vector<16x64xf32>
    %cst_67 = arith.constant 4.471500e-02 : f32
    %159 = vector.broadcast %cst_67 : f32 to vector<16x64xf32>
    %160 = arith.mulf %159, %156 : vector<16x64xf32>
    %161 = arith.mulf %160, %156 : vector<16x64xf32>
    %162 = arith.mulf %161, %156 : vector<16x64xf32>
    %163 = arith.addf %156, %162 : vector<16x64xf32>
    %cst_68 = arith.constant 0.797884583 : f32
    %164 = vector.broadcast %cst_68 : f32 to vector<16x64xf32>
    %165 = arith.mulf %164, %163 : vector<16x64xf32>
    %166 = math.tanh %165 : vector<16x64xf32>
    %cst_69 = arith.constant 1.000000e+00 : f32
    %167 = vector.broadcast %cst_69 : f32 to vector<16x64xf32>
    %168 = arith.addf %167, %166 : vector<16x64xf32>
    %169 = arith.mulf %158, %168 : vector<16x64xf32>
    %c0_70 = arith.constant 0 : index
    %c0_71 = arith.constant 0 : index
    %c0_72 = arith.constant 0 : index
    %170 = vector.load %arg13[%c0_70, %c0_71, %c0_72] : memref<2x64x32xf32, #tpu.memory_space<vmem>>, vector<1x64x32xf32>
    %171 = vector.shape_cast %170 : vector<1x64x32xf32> to vector<64x32xf32>
    %cst_73 = arith.constant dense<0.000000e+00> : vector<16x32xf32>
    %172 = tpu.matmul %169, %171, %cst_73 {dimension_numbers = #tpu.dot_dimension_numbers<[1], [0], [0], [1], [0, 0, 1, 1], [], []>} : vector<16x64xf32>, vector<64x32xf32>, vector<16x32xf32> -> vector<16x32xf32>
    %c0_74 = arith.constant 0 : index
    %c0_75 = arith.constant 0 : index
    %c0_76 = arith.constant 0 : index
    %173 = vector.load %arg14[%c0_74, %c0_75, %c0_76] : memref<2x1x32xf32, #tpu.memory_space<vmem>>, vector<1x1x32xf32>
    %174 = vector.shape_cast %173 : vector<1x1x32xf32> to vector<1x32xf32>
    %175 = vector.broadcast %174 : vector<1x32xf32> to vector<16x32xf32>
    %176 = arith.addf %172, %175 : vector<16x32xf32>
    %177 = arith.addf %123, %176 : vector<16x32xf32>
    %c1 = arith.constant 1 : index
    %c0_77 = arith.constant 0 : index
    %c0_78 = arith.constant 0 : index
    %178 = vector.load %arg3[%c1, %c0_77, %c0_78] : memref<2x1x32xf32, #tpu.memory_space<vmem>>, vector<1x1x32xf32>
    %179 = vector.shape_cast %178 : vector<1x1x32xf32> to vector<1x32xf32>
    %c1_79 = arith.constant 1 : index
    %c0_80 = arith.constant 0 : index
    %c0_81 = arith.constant 0 : index
    %180 = vector.load %arg4[%c1_79, %c0_80, %c0_81] : memref<2x1x32xf32, #tpu.memory_space<vmem>>, vector<1x1x32xf32>
    %181 = vector.shape_cast %180 : vector<1x1x32xf32> to vector<1x32xf32>
    %cst_82 = arith.constant dense<0.000000e+00> : vector<16xf32>
    %182 = vector.multi_reduction <add>, %177, %cst_82 [1] : vector<16x32xf32> to vector<16xf32>
    %183 = vector.shape_cast %182 : vector<16xf32> to vector<16x1xf32>
    %cst_83 = arith.constant 3.200000e+01 : f32
    %184 = vector.broadcast %cst_83 : f32 to vector<16x1xf32>
    %185 = arith.divf %183, %184 : vector<16x1xf32>
    %186 = vector.broadcast %185 : vector<16x1xf32> to vector<16x32xf32>
    %187 = arith.subf %177, %186 : vector<16x32xf32>
    %188 = arith.mulf %187, %187 : vector<16x32xf32>
    %cst_84 = arith.constant dense<0.000000e+00> : vector<16xf32>
    %189 = vector.multi_reduction <add>, %188, %cst_84 [1] : vector<16x32xf32> to vector<16xf32>
    %190 = vector.shape_cast %189 : vector<16xf32> to vector<16x1xf32>
    %cst_85 = arith.constant 3.200000e+01 : f32
    %191 = vector.broadcast %cst_85 : f32 to vector<16x1xf32>
    %192 = arith.divf %190, %191 : vector<16x1xf32>
    %193 = vector.broadcast %185 : vector<16x1xf32> to vector<16x32xf32>
    %194 = arith.subf %177, %193 : vector<16x32xf32>
    %cst_86 = arith.constant 9.99999974E-6 : f32
    %195 = vector.broadcast %cst_86 : f32 to vector<16x1xf32>
    %196 = arith.addf %192, %195 : vector<16x1xf32>
    %197 = math.rsqrt %196 : vector<16x1xf32>
    %198 = vector.broadcast %197 : vector<16x1xf32> to vector<16x32xf32>
    %199 = arith.mulf %194, %198 : vector<16x32xf32>
    %200 = vector.broadcast %179 : vector<1x32xf32> to vector<16x32xf32>
    %201 = arith.mulf %199, %200 : vector<16x32xf32>
    %202 = vector.broadcast %181 : vector<1x32xf32> to vector<16x32xf32>
    %203 = arith.addf %201, %202 : vector<16x32xf32>
    %c1_87 = arith.constant 1 : index
    %c0_88 = arith.constant 0 : index
    %c0_89 = arith.constant 0 : index
    %204 = vector.load %arg5[%c1_87, %c0_88, %c0_89] : memref<2x32x96xf32, #tpu.memory_space<vmem>>, vector<1x32x96xf32>
    %205 = vector.shape_cast %204 : vector<1x32x96xf32> to vector<32x96xf32>
    %cst_90 = arith.constant dense<0.000000e+00> : vector<16x96xf32>
    %206 = tpu.matmul %203, %205, %cst_90 {dimension_numbers = #tpu.dot_dimension_numbers<[1], [0], [0], [1], [0, 0, 1, 1], [], []>} : vector<16x32xf32>, vector<32x96xf32>, vector<16x96xf32> -> vector<16x96xf32>
    %c1_91 = arith.constant 1 : index
    %c0_92 = arith.constant 0 : index
    %c0_93 = arith.constant 0 : index
    %207 = vector.load %arg6[%c1_91, %c0_92, %c0_93] : memref<2x1x96xf32, #tpu.memory_space<vmem>>, vector<1x1x96xf32>
    %208 = vector.shape_cast %207 : vector<1x1x96xf32> to vector<1x96xf32>
    %209 = vector.broadcast %208 : vector<1x96xf32> to vector<16x96xf32>
    %210 = arith.addf %206, %209 : vector<16x96xf32>
    %211 = vector.extract_strided_slice %210 {offsets = [0, 0], sizes = [16, 32], strides = [1, 1]} : vector<16x96xf32> to vector<16x32xf32>
    %cst_94 = arith.constant 0.353553385 : f32
    %212 = vector.broadcast %cst_94 : f32 to vector<16x32xf32>
    %213 = arith.mulf %211, %212 : vector<16x32xf32>
    %214 = vector.extract_strided_slice %210 {offsets = [0, 32], sizes = [16, 32], strides = [1, 1]} : vector<16x96xf32> to vector<16x32xf32>
    %215 = vector.extract_strided_slice %210 {offsets = [0, 64], sizes = [16, 32], strides = [1, 1]} : vector<16x96xf32> to vector<16x32xf32>
    %c1_95 = arith.constant 1 : index
    %c0_96 = arith.constant 0 : index
    %c0_97 = arith.constant 0 : index
    %216 = vector.load %arg7[%c1_95, %c0_96, %c0_97] : memref<2x32x32xf32, #tpu.memory_space<vmem>>, vector<1x32x32xf32>
    %217 = vector.shape_cast %216 : vector<1x32x32xf32> to vector<32x32xf32>
    %cst_98 = arith.constant 0.000000e+00 : f32
    %218 = vector.broadcast %cst_98 : f32 to vector<16x32xf32>
    %219 = vector.extract_strided_slice %213 {offsets = [0, 0], sizes = [16, 8], strides = [1, 1]} : vector<16x32xf32> to vector<16x8xf32>
    %220 = vector.extract_strided_slice %214 {offsets = [0, 0], sizes = [16, 8], strides = [1, 1]} : vector<16x32xf32> to vector<16x8xf32>
    %221 = vector.extract_strided_slice %215 {offsets = [0, 0], sizes = [16, 8], strides = [1, 1]} : vector<16x32xf32> to vector<16x8xf32>
    %cst_99 = arith.constant dense<0.000000e+00> : vector<16x16xf32>
    %222 = tpu.matmul %219, %220, %cst_99 {dimension_numbers = #tpu.dot_dimension_numbers<[1], [1], [0], [0], [0, 0, 1, 0], [], []>} : vector<16x8xf32>, vector<16x8xf32>, vector<16x16xf32> -> vector<16x16xf32>
    %223 = arith.addf %222, %1 : vector<16x16xf32>
    %cst_100 = arith.constant dense<0xFF800000> : vector<16xf32>
    %224 = vector.multi_reduction <maximumf>, %223, %cst_100 [1] : vector<16x16xf32> to vector<16xf32>
    %225 = vector.shape_cast %224 : vector<16xf32> to vector<16x1xf32>
    %226 = vector.broadcast %225 : vector<16x1xf32> to vector<16x16xf32>
    %227 = arith.subf %223, %226 : vector<16x16xf32>
    %228 = math.exp %227 : vector<16x16xf32>
    %cst_101 = arith.constant dense<0.000000e+00> : vector<16xf32>
    %229 = vector.multi_reduction <add>, %228, %cst_101 [1] : vector<16x16xf32> to vector<16xf32>
    %230 = vector.shape_cast %229 : vector<16xf32> to vector<16x1xf32>
    %231 = tpu.reciprocal %230 {approx = true} : vector<16x1xf32> -> vector<16x1xf32>
    %232 = vector.broadcast %231 : vector<16x1xf32> to vector<16x16xf32>
    %233 = arith.mulf %228, %232 : vector<16x16xf32>
    %cst_102 = arith.constant dense<0.000000e+00> : vector<16x8xf32>
    %234 = tpu.matmul %233, %221, %cst_102 {dimension_numbers = #tpu.dot_dimension_numbers<[1], [0], [0], [1], [0, 0, 1, 1], [], []>} : vector<16x16xf32>, vector<16x8xf32>, vector<16x8xf32> -> vector<16x8xf32>
    %235 = vector.extract_strided_slice %217 {offsets = [0, 0], sizes = [8, 32], strides = [1, 1]} : vector<32x32xf32> to vector<8x32xf32>
    %cst_103 = arith.constant dense<0.000000e+00> : vector<16x32xf32>
    %236 = tpu.matmul %234, %235, %cst_103 {dimension_numbers = #tpu.dot_dimension_numbers<[1], [0], [0], [1], [0, 0, 1, 1], [], []>} : vector<16x8xf32>, vector<8x32xf32>, vector<16x32xf32> -> vector<16x32xf32>
    %237 = arith.addf %218, %236 : vector<16x32xf32>
    %238 = vector.extract_strided_slice %213 {offsets = [0, 8], sizes = [16, 8], strides = [1, 1]} : vector<16x32xf32> to vector<16x8xf32>
    %239 = vector.extract_strided_slice %214 {offsets = [0, 8], sizes = [16, 8], strides = [1, 1]} : vector<16x32xf32> to vector<16x8xf32>
    %240 = vector.extract_strided_slice %215 {offsets = [0, 8], sizes = [16, 8], strides = [1, 1]} : vector<16x32xf32> to vector<16x8xf32>
    %cst_104 = arith.constant dense<0.000000e+00> : vector<16x16xf32>
    %241 = tpu.matmul %238, %239, %cst_104 {dimension_numbers = #tpu.dot_dimension_numbers<[1], [1], [0], [0], [0, 0, 1, 0], [], []>} : vector<16x8xf32>, vector<16x8xf32>, vector<16x16xf32> -> vector<16x16xf32>
    %242 = arith.addf %241, %1 : vector<16x16xf32>
    %cst_105 = arith.constant dense<0xFF800000> : vector<16xf32>
    %243 = vector.multi_reduction <maximumf>, %242, %cst_105 [1] : vector<16x16xf32> to vector<16xf32>
    %244 = vector.shape_cast %243 : vector<16xf32> to vector<16x1xf32>
    %245 = vector.broadcast %244 : vector<16x1xf32> to vector<16x16xf32>
    %246 = arith.subf %242, %245 : vector<16x16xf32>
    %247 = math.exp %246 : vector<16x16xf32>
    %cst_106 = arith.constant dense<0.000000e+00> : vector<16xf32>
    %248 = vector.multi_reduction <add>, %247, %cst_106 [1] : vector<16x16xf32> to vector<16xf32>
    %249 = vector.shape_cast %248 : vector<16xf32> to vector<16x1xf32>
    %250 = tpu.reciprocal %249 {approx = true} : vector<16x1xf32> -> vector<16x1xf32>
    %251 = vector.broadcast %250 : vector<16x1xf32> to vector<16x16xf32>
    %252 = arith.mulf %247, %251 : vector<16x16xf32>
    %cst_107 = arith.constant dense<0.000000e+00> : vector<16x8xf32>
    %253 = tpu.matmul %252, %240, %cst_107 {dimension_numbers = #tpu.dot_dimension_numbers<[1], [0], [0], [1], [0, 0, 1, 1], [], []>} : vector<16x16xf32>, vector<16x8xf32>, vector<16x8xf32> -> vector<16x8xf32>
    %254 = vector.extract_strided_slice %217 {offsets = [8, 0], sizes = [8, 32], strides = [1, 1]} : vector<32x32xf32> to vector<8x32xf32>
    %cst_108 = arith.constant dense<0.000000e+00> : vector<16x32xf32>
    %255 = tpu.matmul %253, %254, %cst_108 {dimension_numbers = #tpu.dot_dimension_numbers<[1], [0], [0], [1], [0, 0, 1, 1], [], []>} : vector<16x8xf32>, vector<8x32xf32>, vector<16x32xf32> -> vector<16x32xf32>
    %256 = arith.addf %237, %255 : vector<16x32xf32>
    %257 = vector.extract_strided_slice %213 {offsets = [0, 16], sizes = [16, 8], strides = [1, 1]} : vector<16x32xf32> to vector<16x8xf32>
    %258 = vector.extract_strided_slice %214 {offsets = [0, 16], sizes = [16, 8], strides = [1, 1]} : vector<16x32xf32> to vector<16x8xf32>
    %259 = vector.extract_strided_slice %215 {offsets = [0, 16], sizes = [16, 8], strides = [1, 1]} : vector<16x32xf32> to vector<16x8xf32>
    %cst_109 = arith.constant dense<0.000000e+00> : vector<16x16xf32>
    %260 = tpu.matmul %257, %258, %cst_109 {dimension_numbers = #tpu.dot_dimension_numbers<[1], [1], [0], [0], [0, 0, 1, 0], [], []>} : vector<16x8xf32>, vector<16x8xf32>, vector<16x16xf32> -> vector<16x16xf32>
    %261 = arith.addf %260, %1 : vector<16x16xf32>
    %cst_110 = arith.constant dense<0xFF800000> : vector<16xf32>
    %262 = vector.multi_reduction <maximumf>, %261, %cst_110 [1] : vector<16x16xf32> to vector<16xf32>
    %263 = vector.shape_cast %262 : vector<16xf32> to vector<16x1xf32>
    %264 = vector.broadcast %263 : vector<16x1xf32> to vector<16x16xf32>
    %265 = arith.subf %261, %264 : vector<16x16xf32>
    %266 = math.exp %265 : vector<16x16xf32>
    %cst_111 = arith.constant dense<0.000000e+00> : vector<16xf32>
    %267 = vector.multi_reduction <add>, %266, %cst_111 [1] : vector<16x16xf32> to vector<16xf32>
    %268 = vector.shape_cast %267 : vector<16xf32> to vector<16x1xf32>
    %269 = tpu.reciprocal %268 {approx = true} : vector<16x1xf32> -> vector<16x1xf32>
    %270 = vector.broadcast %269 : vector<16x1xf32> to vector<16x16xf32>
    %271 = arith.mulf %266, %270 : vector<16x16xf32>
    %cst_112 = arith.constant dense<0.000000e+00> : vector<16x8xf32>
    %272 = tpu.matmul %271, %259, %cst_112 {dimension_numbers = #tpu.dot_dimension_numbers<[1], [0], [0], [1], [0, 0, 1, 1], [], []>} : vector<16x16xf32>, vector<16x8xf32>, vector<16x8xf32> -> vector<16x8xf32>
    %273 = vector.extract_strided_slice %217 {offsets = [16, 0], sizes = [8, 32], strides = [1, 1]} : vector<32x32xf32> to vector<8x32xf32>
    %cst_113 = arith.constant dense<0.000000e+00> : vector<16x32xf32>
    %274 = tpu.matmul %272, %273, %cst_113 {dimension_numbers = #tpu.dot_dimension_numbers<[1], [0], [0], [1], [0, 0, 1, 1], [], []>} : vector<16x8xf32>, vector<8x32xf32>, vector<16x32xf32> -> vector<16x32xf32>
    %275 = arith.addf %256, %274 : vector<16x32xf32>
    %276 = vector.extract_strided_slice %213 {offsets = [0, 24], sizes = [16, 8], strides = [1, 1]} : vector<16x32xf32> to vector<16x8xf32>
    %277 = vector.extract_strided_slice %214 {offsets = [0, 24], sizes = [16, 8], strides = [1, 1]} : vector<16x32xf32> to vector<16x8xf32>
    %278 = vector.extract_strided_slice %215 {offsets = [0, 24], sizes = [16, 8], strides = [1, 1]} : vector<16x32xf32> to vector<16x8xf32>
    %cst_114 = arith.constant dense<0.000000e+00> : vector<16x16xf32>
    %279 = tpu.matmul %276, %277, %cst_114 {dimension_numbers = #tpu.dot_dimension_numbers<[1], [1], [0], [0], [0, 0, 1, 0], [], []>} : vector<16x8xf32>, vector<16x8xf32>, vector<16x16xf32> -> vector<16x16xf32>
    %280 = arith.addf %279, %1 : vector<16x16xf32>
    %cst_115 = arith.constant dense<0xFF800000> : vector<16xf32>
    %281 = vector.multi_reduction <maximumf>, %280, %cst_115 [1] : vector<16x16xf32> to vector<16xf32>
    %282 = vector.shape_cast %281 : vector<16xf32> to vector<16x1xf32>
    %283 = vector.broadcast %282 : vector<16x1xf32> to vector<16x16xf32>
    %284 = arith.subf %280, %283 : vector<16x16xf32>
    %285 = math.exp %284 : vector<16x16xf32>
    %cst_116 = arith.constant dense<0.000000e+00> : vector<16xf32>
    %286 = vector.multi_reduction <add>, %285, %cst_116 [1] : vector<16x16xf32> to vector<16xf32>
    %287 = vector.shape_cast %286 : vector<16xf32> to vector<16x1xf32>
    %288 = tpu.reciprocal %287 {approx = true} : vector<16x1xf32> -> vector<16x1xf32>
    %289 = vector.broadcast %288 : vector<16x1xf32> to vector<16x16xf32>
    %290 = arith.mulf %285, %289 : vector<16x16xf32>
    %cst_117 = arith.constant dense<0.000000e+00> : vector<16x8xf32>
    %291 = tpu.matmul %290, %278, %cst_117 {dimension_numbers = #tpu.dot_dimension_numbers<[1], [0], [0], [1], [0, 0, 1, 1], [], []>} : vector<16x16xf32>, vector<16x8xf32>, vector<16x8xf32> -> vector<16x8xf32>
    %292 = vector.extract_strided_slice %217 {offsets = [24, 0], sizes = [8, 32], strides = [1, 1]} : vector<32x32xf32> to vector<8x32xf32>
    %cst_118 = arith.constant dense<0.000000e+00> : vector<16x32xf32>
    %293 = tpu.matmul %291, %292, %cst_118 {dimension_numbers = #tpu.dot_dimension_numbers<[1], [0], [0], [1], [0, 0, 1, 1], [], []>} : vector<16x8xf32>, vector<8x32xf32>, vector<16x32xf32> -> vector<16x32xf32>
    %294 = arith.addf %275, %293 : vector<16x32xf32>
    %295 = arith.addf %177, %294 : vector<16x32xf32>
    %c1_119 = arith.constant 1 : index
    %c0_120 = arith.constant 0 : index
    %c0_121 = arith.constant 0 : index
    %296 = vector.load %arg8[%c1_119, %c0_120, %c0_121] : memref<2x1x32xf32, #tpu.memory_space<vmem>>, vector<1x1x32xf32>
    %297 = vector.shape_cast %296 : vector<1x1x32xf32> to vector<1x32xf32>
    %298 = vector.broadcast %297 : vector<1x32xf32> to vector<16x32xf32>
    %299 = arith.addf %295, %298 : vector<16x32xf32>
    %c1_122 = arith.constant 1 : index
    %c0_123 = arith.constant 0 : index
    %c0_124 = arith.constant 0 : index
    %300 = vector.load %arg9[%c1_122, %c0_123, %c0_124] : memref<2x1x32xf32, #tpu.memory_space<vmem>>, vector<1x1x32xf32>
    %301 = vector.shape_cast %300 : vector<1x1x32xf32> to vector<1x32xf32>
    %c1_125 = arith.constant 1 : index
    %c0_126 = arith.constant 0 : index
    %c0_127 = arith.constant 0 : index
    %302 = vector.load %arg10[%c1_125, %c0_126, %c0_127] : memref<2x1x32xf32, #tpu.memory_space<vmem>>, vector<1x1x32xf32>
    %303 = vector.shape_cast %302 : vector<1x1x32xf32> to vector<1x32xf32>
    %cst_128 = arith.constant dense<0.000000e+00> : vector<16xf32>
    %304 = vector.multi_reduction <add>, %299, %cst_128 [1] : vector<16x32xf32> to vector<16xf32>
    %305 = vector.shape_cast %304 : vector<16xf32> to vector<16x1xf32>
    %cst_129 = arith.constant 3.200000e+01 : f32
    %306 = vector.broadcast %cst_129 : f32 to vector<16x1xf32>
    %307 = arith.divf %305, %306 : vector<16x1xf32>
    %308 = vector.broadcast %307 : vector<16x1xf32> to vector<16x32xf32>
    %309 = arith.subf %299, %308 : vector<16x32xf32>
    %310 = arith.mulf %309, %309 : vector<16x32xf32>
    %cst_130 = arith.constant dense<0.000000e+00> : vector<16xf32>
    %311 = vector.multi_reduction <add>, %310, %cst_130 [1] : vector<16x32xf32> to vector<16xf32>
    %312 = vector.shape_cast %311 : vector<16xf32> to vector<16x1xf32>
    %cst_131 = arith.constant 3.200000e+01 : f32
    %313 = vector.broadcast %cst_131 : f32 to vector<16x1xf32>
    %314 = arith.divf %312, %313 : vector<16x1xf32>
    %315 = vector.broadcast %307 : vector<16x1xf32> to vector<16x32xf32>
    %316 = arith.subf %299, %315 : vector<16x32xf32>
    %cst_132 = arith.constant 9.99999974E-6 : f32
    %317 = vector.broadcast %cst_132 : f32 to vector<16x1xf32>
    %318 = arith.addf %314, %317 : vector<16x1xf32>
    %319 = math.rsqrt %318 : vector<16x1xf32>
    %320 = vector.broadcast %319 : vector<16x1xf32> to vector<16x32xf32>
    %321 = arith.mulf %316, %320 : vector<16x32xf32>
    %322 = vector.broadcast %301 : vector<1x32xf32> to vector<16x32xf32>
    %323 = arith.mulf %321, %322 : vector<16x32xf32>
    %324 = vector.broadcast %303 : vector<1x32xf32> to vector<16x32xf32>
    %325 = arith.addf %323, %324 : vector<16x32xf32>
    %c1_133 = arith.constant 1 : index
    %c0_134 = arith.constant 0 : index
    %c0_135 = arith.constant 0 : index
    %326 = vector.load %arg11[%c1_133, %c0_134, %c0_135] : memref<2x32x64xf32, #tpu.memory_space<vmem>>, vector<1x32x64xf32>
    %327 = vector.shape_cast %326 : vector<1x32x64xf32> to vector<32x64xf32>
    %cst_136 = arith.constant dense<0.000000e+00> : vector<16x64xf32>
    %328 = tpu.matmul %325, %327, %cst_136 {dimension_numbers = #tpu.dot_dimension_numbers<[1], [0], [0], [1], [0, 0, 1, 1], [], []>} : vector<16x32xf32>, vector<32x64xf32>, vector<16x64xf32> -> vector<16x64xf32>
    %c1_137 = arith.constant 1 : index
    %c0_138 = arith.constant 0 : index
    %c0_139 = arith.constant 0 : index
    %329 = vector.load %arg12[%c1_137, %c0_138, %c0_139] : memref<2x1x64xf32, #tpu.memory_space<vmem>>, vector<1x1x64xf32>
    %330 = vector.shape_cast %329 : vector<1x1x64xf32> to vector<1x64xf32>
    %331 = vector.broadcast %330 : vector<1x64xf32> to vector<16x64xf32>
    %332 = arith.addf %328, %331 : vector<16x64xf32>
    %cst_140 = arith.constant 5.000000e-01 : f32
    %333 = vector.broadcast %cst_140 : f32 to vector<16x64xf32>
    %334 = arith.mulf %333, %332 : vector<16x64xf32>
    %cst_141 = arith.constant 4.471500e-02 : f32
    %335 = vector.broadcast %cst_141 : f32 to vector<16x64xf32>
    %336 = arith.mulf %335, %332 : vector<16x64xf32>
    %337 = arith.mulf %336, %332 : vector<16x64xf32>
    %338 = arith.mulf %337, %332 : vector<16x64xf32>
    %339 = arith.addf %332, %338 : vector<16x64xf32>
    %cst_142 = arith.constant 0.797884583 : f32
    %340 = vector.broadcast %cst_142 : f32 to vector<16x64xf32>
    %341 = arith.mulf %340, %339 : vector<16x64xf32>
    %342 = math.tanh %341 : vector<16x64xf32>
    %cst_143 = arith.constant 1.000000e+00 : f32
    %343 = vector.broadcast %cst_143 : f32 to vector<16x64xf32>
    %344 = arith.addf %343, %342 : vector<16x64xf32>
    %345 = arith.mulf %334, %344 : vector<16x64xf32>
    %c1_144 = arith.constant 1 : index
    %c0_145 = arith.constant 0 : index
    %c0_146 = arith.constant 0 : index
    %346 = vector.load %arg13[%c1_144, %c0_145, %c0_146] : memref<2x64x32xf32, #tpu.memory_space<vmem>>, vector<1x64x32xf32>
    %347 = vector.shape_cast %346 : vector<1x64x32xf32> to vector<64x32xf32>
    %cst_147 = arith.constant dense<0.000000e+00> : vector<16x32xf32>
    %348 = tpu.matmul %345, %347, %cst_147 {dimension_numbers = #tpu.dot_dimension_numbers<[1], [0], [0], [1], [0, 0, 1, 1], [], []>} : vector<16x64xf32>, vector<64x32xf32>, vector<16x32xf32> -> vector<16x32xf32>
    %c1_148 = arith.constant 1 : index
    %c0_149 = arith.constant 0 : index
    %c0_150 = arith.constant 0 : index
    %349 = vector.load %arg14[%c1_148, %c0_149, %c0_150] : memref<2x1x32xf32, #tpu.memory_space<vmem>>, vector<1x1x32xf32>
    %350 = vector.shape_cast %349 : vector<1x1x32xf32> to vector<1x32xf32>
    %351 = vector.broadcast %350 : vector<1x32xf32> to vector<16x32xf32>
    %352 = arith.addf %348, %351 : vector<16x32xf32>
    %353 = arith.addf %299, %352 : vector<16x32xf32>
    %354 = tpu.iota {dimensions = array<i32: 0>} : vector<2x16xi32>
    %355 = tpu.iota {dimensions = array<i32: 1>} : vector<2x16xi32>
    %cst_151 = arith.constant 0.000000e+00 : f32
    %356 = vector.broadcast %cst_151 : f32 to vector<2x16xf32>
    %c0_152 = arith.constant 0 : index
    %357 = memref.load %arg0[%c0_152] : memref<2xi32, #tpu.memory_space<smem>>
    %c0_i32 = arith.constant 0 : i32
    %358 = arith.addi %c0_i32, %357 : i32
    %c0_i32_153 = arith.constant 0 : i32
    %359 = vector.broadcast %c0_i32_153 : i32 to vector<2x16xi32>
    %360 = arith.cmpi eq, %354, %359 : vector<2x16xi32>
    %361 = vector.broadcast %358 : i32 to vector<2x16xi32>
    %362 = arith.cmpi eq, %355, %361 : vector<2x16xi32>
    %363 = arith.andi %360, %362 : vector<2x16xi1>
    %cst_154 = arith.constant 1.000000e+00 : f32
    %cst_155 = arith.constant 0.000000e+00 : f32
    %364 = vector.broadcast %cst_154 : f32 to vector<2x16xf32>
    %365 = vector.broadcast %cst_155 : f32 to vector<2x16xf32>
    %366 = arith.select %363, %364, %365 : vector<2x16xi1>, vector<2x16xf32>
    %367 = arith.addf %356, %366 : vector<2x16xf32>
    %c1_156 = arith.constant 1 : index
    %368 = memref.load %arg0[%c1_156] : memref<2xi32, #tpu.memory_space<smem>>
    %c8_i32 = arith.constant 8 : i32
    %369 = arith.addi %c8_i32, %368 : i32
    %c1_i32 = arith.constant 1 : i32
    %370 = vector.broadcast %c1_i32 : i32 to vector<2x16xi32>
    %371 = arith.cmpi eq, %354, %370 : vector<2x16xi32>
    %372 = vector.broadcast %369 : i32 to vector<2x16xi32>
    %373 = arith.cmpi eq, %355, %372 : vector<2x16xi32>
    %374 = arith.andi %371, %373 : vector<2x16xi1>
    %cst_157 = arith.constant 1.000000e+00 : f32
    %cst_158 = arith.constant 0.000000e+00 : f32
    %375 = vector.broadcast %cst_157 : f32 to vector<2x16xf32>
    %376 = vector.broadcast %cst_158 : f32 to vector<2x16xf32>
    %377 = arith.select %374, %375, %376 : vector<2x16xi1>, vector<2x16xf32>
    %378 = arith.addf %367, %377 : vector<2x16xf32>
    %cst_159 = arith.constant dense<0.000000e+00> : vector<2x32xf32>
    %379 = tpu.matmul %378, %353, %cst_159 {dimension_numbers = #tpu.dot_dimension_numbers<[1], [0], [0], [1], [0, 0, 1, 1], [], []>} : vector<2x16xf32>, vector<16x32xf32>, vector<2x32xf32> -> vector<2x32xf32>
    %c0_160 = arith.constant 0 : index
    %c0_161 = arith.constant 0 : index
    %380 = vector.load %arg15[%c0_160, %c0_161] : memref<1x32xf32, #tpu.memory_space<vmem>>, vector<1x32xf32>
    %c0_162 = arith.constant 0 : index
    %c0_163 = arith.constant 0 : index
    %381 = vector.load %arg16[%c0_162, %c0_163] : memref<1x32xf32, #tpu.memory_space<vmem>>, vector<1x32xf32>
    %cst_164 = arith.constant dense<0.000000e+00> : vector<2xf32>
    %382 = vector.multi_reduction <add>, %379, %cst_164 [1] : vector<2x32xf32> to vector<2xf32>
    %383 = vector.shape_cast %382 : vector<2xf32> to vector<2x1xf32>
    %cst_165 = arith.constant 3.200000e+01 : f32
    %384 = vector.broadcast %cst_165 : f32 to vector<2x1xf32>
    %385 = arith.divf %383, %384 : vector<2x1xf32>
    %386 = vector.broadcast %385 : vector<2x1xf32> to vector<2x32xf32>
    %387 = arith.subf %379, %386 : vector<2x32xf32>
    %388 = arith.mulf %387, %387 : vector<2x32xf32>
    %cst_166 = arith.constant dense<0.000000e+00> : vector<2xf32>
    %389 = vector.multi_reduction <add>, %388, %cst_166 [1] : vector<2x32xf32> to vector<2xf32>
    %390 = vector.shape_cast %389 : vector<2xf32> to vector<2x1xf32>
    %cst_167 = arith.constant 3.200000e+01 : f32
    %391 = vector.broadcast %cst_167 : f32 to vector<2x1xf32>
    %392 = arith.divf %390, %391 : vector<2x1xf32>
    %393 = vector.broadcast %385 : vector<2x1xf32> to vector<2x32xf32>
    %394 = arith.subf %379, %393 : vector<2x32xf32>
    %cst_168 = arith.constant 9.99999974E-6 : f32
    %395 = vector.broadcast %cst_168 : f32 to vector<2x1xf32>
    %396 = arith.addf %392, %395 : vector<2x1xf32>
    %397 = math.rsqrt %396 : vector<2x1xf32>
    %398 = vector.broadcast %397 : vector<2x1xf32> to vector<2x32xf32>
    %399 = arith.mulf %394, %398 : vector<2x32xf32>
    %400 = vector.broadcast %380 : vector<1x32xf32> to vector<2x32xf32>
    %401 = arith.mulf %399, %400 : vector<2x32xf32>
    %402 = vector.broadcast %381 : vector<1x32xf32> to vector<2x32xf32>
    %403 = arith.addf %401, %402 : vector<2x32xf32>
    %c0_169 = arith.constant 0 : index
    %c0_170 = arith.constant 0 : index
    %404 = vector.load %arg17[%c0_169, %c0_170] : memref<32x16xf32, #tpu.memory_space<vmem>>, vector<32x16xf32>
    %cst_171 = arith.constant dense<0.000000e+00> : vector<2x16xf32>
    %405 = tpu.matmul %403, %404, %cst_171 {dimension_numbers = #tpu.dot_dimension_numbers<[1], [0], [0], [1], [0, 0, 1, 1], [], []>} : vector<2x32xf32>, vector<32x16xf32>, vector<2x16xf32> -> vector<2x16xf32>
    %406 = arith.mulf %405, %405 : vector<2x16xf32>
    %cst_172 = arith.constant dense<0.000000e+00> : vector<2xf32>
    %407 = vector.multi_reduction <add>, %406, %cst_172 [1] : vector<2x16xf32> to vector<2xf32>
    %408 = vector.shape_cast %407 : vector<2xf32> to vector<2x1xf32>
    %409 = math.rsqrt %408 : vector<2x1xf32>
    %410 = vector.broadcast %409 : vector<2x1xf32> to vector<2x16xf32>
    %411 = arith.mulf %405, %410 : vector<2x16xf32>
    %c0_173 = arith.constant 0 : index
    %c0_174 = arith.constant 0 : index
    %412 = vector.load %arg18[%c0_173, %c0_174] : memref<2x16xf32, #tpu.memory_space<vmem>>, vector<2x16xf32>
    tpu.vector_store %arg18[%c0_173, %c0_174], %411 {strides = array<i32>} : memref<2x16xf32, #tpu.memory_space<vmem>>, vector<2x16xf32>,
    return
  }
}

</mosaic_0001>

<bundles_post_ra>
// kernel: clip_text_features.1
= control target key start
LH: loop header
LB: loop body
LE: loop exit
PB: predicated region body
PF: predicated region fallthrough
CT: control target
= control target key end

     0   :  { %s2680_s0 = inlined_call_operand.vmem [shape: s32[2], index: 0, kind: input, shape index: {}]   ;;  %s2681_s1 = inlined_call_operand.vmem [shape: f32[16,32], index: 1, kind: input, shape index: {}]   ;;  %s2682_s2 = inlined_call_operand.vmem [shape: f32[16,16], index: 2, kind: input, shape index: {}]   ;;  %s2683_s3 = inlined_call_operand.vmem [shape: f32[2,1,32], index: 3, kind: input, shape index: {}]   ;;  %s2684_s4 = inlined_call_operand.vmem [shape: f32[2,1,32], index: 4, kind: input, shape index: {}]   ;;  %s2685_s5 = inlined_call_operand.vmem [shape: f32[2,32,96], index: 5, kind: input, shape index: {}]   ;;  %s2686_s6 = inlined_call_operand.vmem [shape: f32[2,1,96], index: 6, kind: input, shape index: {}]   ;;  %s2687_s7 = inlined_call_operand.vmem [shape: f32[2,32,32], index: 7, kind: input, shape index: {}]   ;;  %s2688_s8 = inlined_call_operand.vmem [shape: f32[2,1,32], index: 8, kind: input, shape index: {}]   ;;  %s2689_s9 = inlined_call_operand.vmem [shape: f32[2,1,32], index: 9, kind: input, shape index: {}]   ;;  %s2690_s10 = inlined_call_operand.vmem [shape: f32[2,1,32], index: 10, kind: input, shape index: {}]   ;;  %s2691_s11 = inlined_call_operand.vmem [shape: f32[2,32,64], index: 11, kind: input, shape index: {}]   ;;  %s2692_s12 = inlined_call_operand.vmem [shape: f32[2,1,64], index: 12, kind: input, shape index: {}]   ;;  %s2693_s13 = inlined_call_operand.vmem [shape: f32[2,64,32], index: 13, kind: input, shape index: {}]   ;;  %s2694_s14 = inlined_call_operand.vmem [shape: f32[2,1,32], index: 14, kind: input, shape index: {}]   ;;  %s2695_s15 = inlined_call_operand.vmem [shape: f32[1,32], index: 15, kind: input, shape index: {}]   ;;  %s2696_s16 = inlined_call_operand.vmem [shape: f32[1,32], index: 16, kind: input, shape index: {}]   ;;  %s2697_s17 = inlined_call_operand.vmem [shape: f32[32,16], index: 17, kind: input, shape index: {}]   ;;  %s2698_s18 = inlined_call_operand.hbm [shape: f32[2,16], index: 18, kind: output, shape index: {}]  }
   0x1   :  { %2712 = sst [smem:[#allocation8_spill]] %s2680_s0 }
   0x2   :  { %2713 = sst [smem:[#allocation9_spill]] %s2681_s1 }
   0x3   :  { %2714 = sst [smem:[#allocation10_spill]] %s2682_s2 }
   0x4   :  { %23 = vsyncpa [#allocation4], 0 }
   0x5   :  { %24 = vsyncpa [#allocation3], 0  ;;  %s2715_s29 = sld [smem:[#allocation8_spill]]  ;;  %s2082_s0 = smov [#allocation2]  }
   0xb   :  { %s30_s30 = sshll.u32 %s2715_s29, 4  ;;  %s31_s30 = int_to_ptr.vmem [resolvable:$true] %s30_s30 }
   0xc   :  { %33 = dma.vmem_to_smem %s31_s30, 16, %s2082_s0, [#allocation4]  }
   0xd   :  { %2078 = dma.done.wait [#allocation4], 16  }
   0xe   :  { %2079 = vsyncadd [#allocation4], 4294967280 }
   0xf   :  { %72 = sfence }
  0x10   :  { %s2716_s20 = sld [smem:[#allocation9_spill]]  ;;  %vm79_vm0 = vcmask 261120   ;;  %v2083_v4 = vmov 32.0   ;;  %v144_v21 = vld [vmem:[%s2685_s5 + $0x18] sm:$0xff]  ;;  %v143_v22 = vld [vmem:[%s2685_s5 + $0x10] sm:$0xff]  ;;  %v142_v23 = vld [vmem:[%s2685_s5 + $0x8] sm:$0xff] }
  0x11   :  { %1946 = vrcp.f32 %v2083_v4  ;;  %167 = vmatpush.msra.mxu0 %v144_v21  ;;  %v141_v24 = vld [vmem:[%s2685_s5] sm:$0xff]  ;;  %s2084_s22 = smov 96   ;;  %vm190_vm8 = vcmask 64512   ;;  %s2717_s24 = sld [smem:[#allocation10_spill]]  ;;  %vm224_vm9 = vcmask 130048  }
  0x12   :  { %v1928_v39 = vld [vmem:[%s2683_s3] ss:$0 sm:$0xff]  ;;  %s2085_s27 = smov 64   ;;  %s2086_s28 = smov 88  }
  0x13   :  { %168 = vmatpush.msra.mxu0 %v143_v22  ;;  %v1929_v43 = vld [vmem:[%s2684_s4] ss:$0 sm:$0xff]  ;;  %s2087_s29 = smov 120   ;;  %s2706_s30 = smov 72  }
  0x14   :  { %v1930_v54 = vld [vmem:[%s2686_s6] ss:$0 sm:$0xff]  ;;  %s2704_s0 = smov 104   ;;  %s2708_s21 = smov 112  }
  0x15   :  { %169 = vmatpush.msra.mxu0 %v142_v23  ;;  %s2703_s2 = smov 56   ;;  %s2701_s23 = smov 48  }
  0x16   :  { %v2198_v0 = vld [vmem:[%s2716_s20] sm:$0xff]  ;;  %v2205_v2 = vld [vmem:[%s2716_s20 + $0x8] sm:$0xff]  ;;  %s2710_s20 = smov 80   ;;  %s2702_s25 = smov 40  }
  0x17   :  { %v80_v1 = vsel %vm79_vm0, %v2198_v0, 0.0  ;;  %v83_v3 = vsel %vm79_vm0, %v2205_v2, 0.0  ;;  %v1947_v5 = vpop.eup %1946  ;;  %170 = vmatpush.msra.mxu0 %v141_v24  ;;  %v2259_v62 = vld [vmem:[%s2717_s24] sm:$0xff]  ;;  %v2266_v4 = vld [vmem:[%s2717_s24 + $0x8] sm:$0xff]  ;;  %s1756_s1 = sshll.u32 %s2698_s18, 4  ;;  %s1757_s1 = int_to_ptr.hbm [resolvable:$true] %s1756_s1 }
  0x18   :  { %81 = vadd.xlane.f32.xlu0 %v80_v1  ;;  %v87_v6 = vmul.f32 32.0, %v1947_v5  ;;  %vm91_vm1 = vweird.f32 %v1947_v5 }
  0x1a   :  { %v88_v7 = vsub.f32 1.0, %v87_v6 }
  0x1c   :  { %v89_v8 = vmul.f32 %v1947_v5, %v88_v7 }
  0x1e   :  { %v90_v9 = vadd.f32 %v1947_v5, %v89_v8 }
  0x20   :  { %84 = vadd.xlane.f32.xlu0 %v83_v3  ;;  %v2209_v10 = vsel %vm91_vm1, %v1947_v5, %v90_v9  ;;  %vm821_vm1 = vcmask 523264  }
  0x8b   :  { %v82_v11 = vpop.xlane.xlu0 %81 }
  0x8c   :  { %v93_v12 = vmul.f32 %v2209_v10, %v82_v11 }
  0x8e   :  { %v95_v13 = vsub.f32 %v2198_v0, %v93_v12 }
  0x90   :  { %v97_v14 = vmul.f32 %v95_v13, %v95_v13 }
  0x92   :  { %v99_v15 = vsel %vm79_vm0, %v97_v14, 0.0 }
  0x93   :  { %100 = vadd.xlane.f32.xlu1 %v99_v15  ;;  %v85_v16 = vpop.xlane.xlu0 %84 }
  0x94   :  { %v94_v17 = vmul.f32 %v2209_v10, %v85_v16 }
  0x96   :  { %v96_v18 = vsub.f32 %v2205_v2, %v94_v17 }
  0x98   :  { %v98_v19 = vmul.f32 %v96_v18, %v96_v18 }
  0x9a   :  { %v102_v20 = vsel %vm79_vm0, %v98_v19, 0.0 }
  0x9b   :  { %103 = vadd.xlane.f32.xlu1 %v102_v20 }
 0x106   :  { %v101_v25 = vpop.xlane.xlu1 %100 }
 0x107   :  { %v105_v26 = vmul.f32 %v101_v25, %v2209_v10 }
 0x109   :  { %v107_v27 = vadd.f32 1e-05, %v105_v26 }
 0x10b   :  { %1948 = vrsqrt.f32 %v107_v27  ;;  %vm115_vm3 = vweird.f32 %v107_v27 }
 0x10e   :  { %v104_v28 = vpop.xlane.xlu1 %103 }
 0x10f   :  { %v106_v29 = vmul.f32 %v104_v28, %v2209_v10 }
 0x111   :  { %v1949_v30 = vpop.eup %1948  ;;  %v108_v31 = vadd.f32 1e-05, %v106_v29 }
 0x112   :  { %v110_v32 = vmul.f32 %v1949_v30, %v107_v27  ;;  %vm116_vm2 = vweird.f32 %v1949_v30 }
 0x113   :  { %1950 = vrsqrt.f32 %v108_v31  ;;  %vm117_vm4 = vmor %vm115_vm3, %vm116_vm2  ;;  %vm125_vm6 = vweird.f32 %v108_v31 }
 0x114   :  { %v111_v33 = vmul.f32 %v1949_v30, %v110_v32 }
 0x116   :  { %v112_v34 = vmul.f32 0.5, %v111_v33 }
 0x118   :  { %v113_v35 = vsub.f32 1.5, %v112_v34 }
 0x119   :  { %v1951_v36 = vpop.eup %1950 }
 0x11a   :  { %v114_v37 = vmul.f32 %v1949_v30, %v113_v35  ;;  %v120_v38 = vmul.f32 %v1951_v36, %v108_v31  ;;  %vm126_vm5 = vweird.f32 %v1951_v36 }
 0x11b   :  { %vm127_vm7 = vmor %vm125_vm6, %vm126_vm5 }
 0x11c   :  { %v118_v40 = vsel %vm117_vm4, %v1949_v30, %v114_v37  ;;  %v121_v41 = vmul.f32 %v1951_v36, %v120_v38 }
 0x11d   :  { %v129_v42 = vmul.f32 %v118_v40, %v95_v13  ;;  %v180_v13 = vld [vmem:[%s2687_s7] sm:$0xff] }
 0x11e   :  { %v122_v44 = vmul.f32 0.5, %v121_v41 }
 0x11f   :  { %v134_v45 = vmul.f32 %v1928_v39, %v129_v42 }
 0x120   :  { %v123_v46 = vsub.f32 1.5, %v122_v44 }
 0x121   :  { %v139_v47 = vadd.f32 %v1929_v43, %v134_v45 }
 0x122   :  { %v124_v48 = vmul.f32 %v1951_v36, %v123_v46 }
 0x123   :  { %1766 = vmatmul.msk.f32.vlgmr.msra.gmra.mxu0 %vm79_vm0, %v139_v47 }
 0x124   :  { %v128_v49 = vsel %vm127_vm7, %v1951_v36, %v124_v48 }
 0x125   :  { %v130_v50 = vmul.f32 %v128_v49, %v96_v18 }
 0x127   :  { %v135_v51 = vmul.f32 %v1928_v39, %v130_v50 }
 0x129   :  { %v140_v52 = vadd.f32 %v1929_v43, %v135_v51 }
 0x12b   :  { %1767 = vmatmul.msk.f32.gmra.mxu0 %vm79_vm0, %v140_v52 }
 0x1a0   :  { %v172_v53 = vpop.f32.mrf.mxu0 }
 0x1a1   :  { %v2246_v57 = vadd.f32 %v1930_v54, %v172_v53 }
 0x1a3   :  { %v178_v60 = vmul.f32 0.35355338, %v2246_v57 }
 0x1a8   :  { %v175_v55 = vpop.f32.mrf.mxu0 }
 0x1a9   :  { %v2242_v56 = vadd.f32 %v1930_v54, %v175_v55 }
 0x1ab   :  { %188 = vrot.lane.b32.xlu2 %v2242_v56, %s2084_s22  ;;  %v179_v61 = vmul.f32 0.35355338, %v2242_v56  ;;  %v2272_v8 = vpack.i.bf16 %v2246_v57, %v2242_v56 }
 0x1b3   :  { %186 = vrot.lane.b32.xlu2 %v2246_v57, %s2084_s22 }
 0x205   :  { %v189_v58 = vpop.permute.xlu2 %188 }
 0x206   :  { %1768 = vmatpush.xpose.msk.msra.mxu1 %vm190_vm8, %v189_v58 }
 0x20d   :  { %v187_v59 = vpop.permute.xlu2 %186 }
 0x20e   :  { %1769 = vmatpush.xpose.msk.msra.mxu1 %vm190_vm8, %v187_v59 }
 0x211   :  { %1770 = vmatmul.msk.f32.vlgmr.msra.gmra.mxu1 %vm190_vm8, %v178_v60 }
 0x212   :  { %428 = vmatpush.msrb.mxu1 %v180_v13 }
 0x219   :  { %1771 = vmatmul.msk.f32.gmra.mxu1 %vm190_vm8, %v179_v61 }
 0x28e   :  { %v218_v63 = vpop.f32.mrf.mxu1 }
 0x28f   :  { %v219_v1 = vadd.f32 %v218_v63, %v2259_v62 }
 0x291   :  { %v225_v3 = vsel %vm224_vm9, %v219_v1, -inf }
 0x292   :  { %226 = vmax.xlane.f32.xlu0 %v225_v3 }
 0x296   :  { %v221_v5 = vpop.f32.mrf.mxu1 }
 0x297   :  { %v222_v6 = vadd.f32 %v221_v5, %v2266_v4 }
 0x299   :  { %v228_v7 = vsel %vm224_vm9, %v222_v6, -inf }
 0x29a   :  { %229 = vmax.xlane.f32.xlu1 %v228_v7 }
 0x2a6   :  { %1889 = vrot.lane.b32.xlu0 %v2272_v8, %s2085_s27 }
 0x2ae   :  { %286 = vrot.lane.b32.xlu0 %v2246_v57, %s2086_s28 }
 0x2b6   :  { %282 = vrot.lane.b32.xlu0 %v178_v60, %s2087_s29 }
 0x2be   :  { %569 = vrot.lane.b32.xlu0 %v2242_v56, %s2706_s30 }
 0x2c6   :  { %567 = vrot.lane.b32.xlu0 %v2246_v57, %s2706_s30 }
 0x2ce   :  { %563 = vrot.lane.b32.xlu0 %v178_v60, %s2704_s0 }
 0x305   :  { %v227_v9 = vpop.xlane.xlu0 %226 }
 0x306   :  { %v231_v11 = vsub.f32 %v219_v1, %v227_v9 }
 0x308   :  { %v233_v12 = vmul.f32 1.442695, %v231_v11 }
 0x30a   :  { %1952 = vpow2.f32 %v233_v12 }
 0x30d   :  { %v230_v14 = vpop.xlane.xlu1 %229 }
 0x30e   :  { %v232_v15 = vsub.f32 %v222_v6, %v230_v14 }
 0x310   :  { %v1953_v16 = vpop.eup %1952  ;;  %v235_v17 = vmul.f32 1.442695, %v232_v15 }
 0x311   :  { %v237_v18 = vsel %vm224_vm9, %v1953_v16, 0.0 }
 0x312   :  { %1954 = vpow2.f32 %v235_v17  ;;  %238 = vadd.xlane.f32.xlu2 %v237_v18 }
 0x318   :  { %v1955_v19 = vpop.eup %1954  ;;  %v1890_v20 = vpop.permute.xlu0 %1889 }
 0x319   :  { %v240_v21 = vsel %vm224_vm9, %v1955_v19, 0.0  ;;  %v1891_v22 = vunpack.i.l.bf16 %v1890_v20  ;;  %v1892_v23 = vunpack.i.h.bf16 %v1890_v20 }
 0x31a   :  { %241 = vadd.xlane.f32.xlu1 %v240_v21 }
 0x31b   :  { %273 = vmatpush.msra.mxu2 %v1891_v22 }
 0x31d   :  { %274 = vmatpush.msra.mxu2 %v1892_v23 }
 0x320   :  { %v287_v24 = vpop.permute.xlu0 %286 }
 0x328   :  { %v283_v25 = vpop.permute.xlu0 %282 }
 0x32a   :  { %442 = vrot.lane.b32.xlu2 %v2242_v56, %s2710_s20 }
 0x330   :  { %v570_v26 = vpop.permute.xlu0 %569 }
 0x331   :  { %1792 = vmatpush.xpose.msk.msra.mxu1 %vm190_vm8, %v570_v26 }
 0x332   :  { %565 = vrot.lane.b32.xlu2 %v179_v61, %s2704_s0 }
 0x333   :  { %288 = vrot.lane.b32.xlu1 %v2242_v56, %s2086_s28 }
 0x338   :  { %v568_v27 = vpop.permute.xlu0 %567 }
 0x339   :  { %1793 = vmatpush.xpose.msk.msra.mxu1 %vm190_vm8, %v568_v27 }
 0x33b   :  { %284 = vrot.lane.b32.xlu1 %v179_v61, %s2087_s29 }
 0x340   :  { %v564_v42 = vpop.permute.xlu0 %563 }
 0x343   :  { %440 = vrot.lane.b32.xlu1 %v2246_v57, %s2710_s20  ;;  %s2724_s20 = smov 40  }
 0x34b   :  { %436 = vrot.lane.b32.xlu1 %v178_v60, %s2708_s21 }
 0x353   :  { %438 = vrot.lane.b32.xlu1 %v179_v61, %s2708_s21 }
 0x385   :  { %v239_v28 = vpop.xlane.xlu2 %238 }
 0x386   :  { %1956 = vrcp.f32 %v239_v28 }
 0x38c   :  { %v1957_v29 = vpop.eup %1956 }
 0x38d   :  { %v242_v30 = vpop.xlane.xlu1 %241  ;;  %v245_v31 = vmul.f32 %v1957_v29, %v1953_v16  ;;  %v443_v35 = vpop.permute.xlu2 %442 }
 0x38e   :  { %1958 = vrcp.f32 %v242_v30 }
 0x38f   :  { %1772 = vmatmul.msk.f32.vlgmr.msra.gmra.mxu2 %vm224_vm9, %v245_v31 }
 0x394   :  { %v1959_v32 = vpop.eup %1958 }
 0x395   :  { %v246_v33 = vmul.f32 %v1959_v32, %v1955_v19  ;;  %v566_v43 = vpop.permute.xlu2 %565 }
 0x397   :  { %1773 = vmatmul.msk.f32.gmra.mxu2 %vm224_vm9, %v246_v33 }
 0x3a5   :  { %v289_v34 = vpop.permute.xlu1 %288 }
 0x3a6   :  { %1774 = vmatpush.xpose.msk.msra.mxu3 %vm190_vm8, %v289_v34 }
 0x3aa   :  { %1775 = vmatpush.xpose.msk.msra.mxu3 %vm190_vm8, %v287_v24 }
 0x3ad   :  { %1776 = vmatmul.msk.f32.vlgmr.msra.gmra.mxu3 %vm190_vm8, %v283_v25  ;;  %v285_v36 = vpop.permute.xlu1 %284 }
 0x3ae   :  { %1784 = vmatpush.xpose.msk.msrb.mxu3 %vm190_vm8, %v443_v35 }
 0x3b5   :  { %1777 = vmatmul.msk.f32.gmra.mxu3 %vm190_vm8, %v285_v36  ;;  %v441_v37 = vpop.permute.xlu1 %440 }
 0x3b6   :  { %1785 = vmatpush.xpose.msk.msrb.mxu3 %vm190_vm8, %v441_v37 }
 0x3bd   :  { %v437_v38 = vpop.permute.xlu1 %436 }
 0x3be   :  { %1786 = vmatmul.msk.f32.vlgmr.msrb.gmra.mxu3 %vm190_vm8, %v437_v38 }
 0x3c5   :  { %v439_v39 = vpop.permute.xlu1 %438 }
 0x3c6   :  { %1787 = vmatmul.msk.f32.gmra.mxu3 %vm190_vm8, %v439_v39 }
 0x412   :  { %v276_v40 = vpop.f32.mrf.mxu2 }
 0x413   :  { %1782 = vmatmul.msk.f32.vlgmr.msrb.gmra.mxu1 %vm190_vm8, %v276_v40 }
 0x41a   :  { %v279_v41 = vpop.f32.mrf.mxu2 }
 0x41b   :  { %1783 = vmatmul.msk.f32.gmra.mxu1 %vm190_vm8, %v279_v41 }
 0x423   :  { %1794 = vmatmul.msk.f32.vlgmr.msra.gmra.mxu1 %vm190_vm8, %v564_v42 }
 0x42b   :  { %1795 = vmatmul.msk.f32.gmra.mxu1 %vm190_vm8, %v566_v43 }
 0x430   :  { %v315_v44 = vpop.f32.mrf.mxu3 }
 0x431   :  { %v316_v45 = vadd.f32 %v315_v44, %v2259_v62 }
 0x433   :  { %v321_v46 = vsel %vm224_vm9, %v316_v45, -inf }
 0x434   :  { %322 = vmax.xlane.f32.xlu0 %v321_v46 }
 0x438   :  { %v318_v47 = vpop.f32.mrf.mxu3 }
 0x439   :  { %v319_v48 = vadd.f32 %v318_v47, %v2266_v4 }
 0x43b   :  { %v324_v49 = vsel %vm224_vm9, %v319_v48, -inf }
 0x43c   :  { %325 = vmax.xlane.f32.xlu1 %v324_v49 }
 0x441   :  { %v469_v50 = vpop.f32.mrf.mxu3 }
 0x442   :  { %v470_v51 = vadd.f32 %v469_v50, %v2259_v62 }
 0x444   :  { %v475_v52 = vsel %vm224_vm9, %v470_v51, -inf }
 0x445   :  { %476 = vmax.xlane.f32.xlu0 %v475_v52 }
 0x449   :  { %v472_v53 = vpop.f32.mrf.mxu3 }
 0x44a   :  { %v473_v54 = vadd.f32 %v472_v53, %v2266_v4 }
 0x44c   :  { %v478_v55 = vsel %vm224_vm9, %v473_v54, -inf }
 0x44d   :  { %479 = vmax.xlane.f32.xlu1 %v478_v55 }
 0x490   :  { %v2323_v56 = vpop.f32.mrf.mxu1 }
 0x498   :  { %v2325_v57 = vpop.f32.mrf.mxu1 }
 0x4a0   :  { %v596_v58 = vpop.f32.mrf.mxu1 }
 0x4a1   :  { %v597_v59 = vadd.f32 %v596_v58, %v2259_v62 }
 0x4a3   :  { %v602_v60 = vsel %vm224_vm9, %v597_v59, -inf }
 0x4a4   :  { %603 = vmax.xlane.f32.xlu2 %v602_v60 }
 0x4a7   :  { %v323_v61 = vpop.xlane.xlu0 %322 }
 0x4a8   :  { %v327_v63 = vsub.f32 %v316_v45, %v323_v61  ;;  %v599_v1 = vpop.f32.mrf.mxu1 }
 0x4a9   :  { %v600_v3 = vadd.f32 %v599_v1, %v2266_v4 }
 0x4aa   :  { %v329_v5 = vmul.f32 1.442695, %v327_v63 }
 0x4ab   :  { %v605_v6 = vsel %vm224_vm9, %v600_v3, -inf }
 0x4ac   :  { %1960 = vpow2.f32 %v329_v5  ;;  %606 = vmax.xlane.f32.xlu2 %v605_v6 }
 0x4af   :  { %v326_v7 = vpop.xlane.xlu1 %325 }
 0x4b0   :  { %v328_v9 = vsub.f32 %v319_v48, %v326_v7 }
 0x4b2   :  { %v1961_v11 = vpop.eup %1960  ;;  %v331_v12 = vmul.f32 1.442695, %v328_v9 }
 0x4b3   :  { %v333_v13 = vsel %vm224_vm9, %v1961_v11, 0.0 }
 0x4b4   :  { %1962 = vpow2.f32 %v331_v12  ;;  %334 = vadd.xlane.f32.xlu0 %v333_v13 }
 0x4b8   :  { %v477_v14 = vpop.xlane.xlu0 %476 }
 0x4b9   :  { %v481_v15 = vsub.f32 %v470_v51, %v477_v14  ;;  %v181_v51 = vld [vmem:[%s2687_s7 + $0x8] sm:$0xff] }
 0x4ba   :  { %v1963_v16 = vpop.eup %1962  ;;  %399 = vmatpush.msrb.mxu0 %v181_v51 }
 0x4bb   :  { %v483_v17 = vmul.f32 1.442695, %v481_v15  ;;  %v336_v18 = vsel %vm224_vm9, %v1963_v16, 0.0 }
 0x4bc   :  { %337 = vadd.xlane.f32.xlu1 %v336_v18 }
 0x4bd   :  { %1964 = vpow2.f32 %v483_v17 }
 0x4c0   :  { %v480_v24 = vpop.xlane.xlu1 %479 }
 0x4c1   :  { %v482_v28 = vsub.f32 %v473_v54, %v480_v24  ;;  %v183_v54 = vld [vmem:[%s2687_s7 + $0x18] sm:$0xff] }
 0x4c3   :  { %v1965_v19 = vpop.eup %1964  ;;  %v485_v31 = vmul.f32 1.442695, %v482_v28 }
 0x4c4   :  { %1894 = vrot.lane.b32.xlu2 %v2272_v8, %s2703_s2  ;;  %v487_v20 = vsel %vm224_vm9, %v1965_v19, 0.0  ;;  %s2721_s2 = smov 104  }
 0x4c5   :  { %488 = vadd.xlane.f32.xlu1 %v487_v20 }
 0x4cc   :  { %1904 = vrot.lane.b32.xlu2 %v2272_v8, %s2701_s23 }
 0x517   :  { %v604_v21 = vpop.xlane.xlu2 %603 }
 0x518   :  { %v608_v22 = vsub.f32 %v597_v59, %v604_v21 }
 0x51a   :  { %v610_v23 = vmul.f32 1.442695, %v608_v22  ;;  %v1931_v22 = vld [vmem:[%s2688_s8] ss:$0 sm:$0xff] }
 0x51c   :  { %1966 = vpow2.f32 %v610_v23 }
 0x51f   :  { %v607_v25 = vpop.xlane.xlu2 %606 }
 0x520   :  { %v609_v26 = vsub.f32 %v600_v3, %v607_v25 }
 0x522   :  { %v1967_v27 = vpop.eup %1966  ;;  %v612_v29 = vmul.f32 1.442695, %v609_v26 }
 0x523   :  { %v614_v30 = vsel %vm224_vm9, %v1967_v27, 0.0 }
 0x524   :  { %1968 = vpow2.f32 %v612_v29  ;;  %615 = vadd.xlane.f32.xlu0 %v614_v30 }
 0x527   :  { %v1895_v32 = vpop.permute.xlu2 %1894  ;;  %v335_v33 = vpop.xlane.xlu0 %334 }
 0x528   :  { %1970 = vrcp.f32 %v335_v33  ;;  %v1896_v34 = vunpack.i.l.bf16 %v1895_v32  ;;  %v1897_v36 = vunpack.i.h.bf16 %v1895_v32 }
 0x529   :  { %1972 = vpow2.f32 %v485_v31 }
 0x52a   :  { %v1969_v35 = vpop.eup %1968  ;;  %369 = vmatpush.msrb.mxu2 %v1896_v34 }
 0x52b   :  { %v617_v37 = vsel %vm224_vm9, %v1969_v35, 0.0 }
 0x52c   :  { %370 = vmatpush.msrb.mxu2 %v1897_v36  ;;  %618 = vadd.xlane.f32.xlu1 %v617_v37 }
 0x52e   :  { %v1971_v38 = vpop.eup %1970 }
 0x52f   :  { %v1905_v39 = vpop.permute.xlu2 %1904  ;;  %v338_v40 = vpop.xlane.xlu1 %337  ;;  %v341_v41 = vmul.f32 %v1971_v38, %v1961_v11 }
 0x530   :  { %v1973_v42 = vpop.eup %1972  ;;  %v1906_v43 = vunpack.i.l.bf16 %v1905_v39  ;;  %1974 = vrcp.f32 %v338_v40  ;;  %v1907_v44 = vunpack.i.h.bf16 %v1905_v39  ;;  %v757_v40 = vld [vmem:[%s2691_s11 + $0x18] sm:$0xff] }
 0x531   :  { %1778 = vmatmul.msk.f32.vlgmr.msrb.gmra.mxu2 %vm224_vm9, %v341_v41  ;;  %v490_v45 = vsel %vm224_vm9, %v1973_v42, 0.0  ;;  %v756_v41 = vld [vmem:[%s2691_s11 + $0x10] sm:$0xff] }
 0x532   :  { %523 = vmatpush.msra.mxu2 %v1906_v43  ;;  %v754_v43 = vld [vmem:[%s2691_s11] sm:$0xff] }
 0x534   :  { %524 = vmatpush.msra.mxu2 %v1907_v44  ;;  %491 = vadd.xlane.f32.xlu1 %v490_v45 }
 0x536   :  { %v1975_v46 = vpop.eup %1974  ;;  %680 = vmatpush.msrb.mxu2 %v183_v54 }
 0x537   :  { %v342_v47 = vmul.f32 %v1975_v46, %v1963_v16 }
 0x538   :  { %1899 = vrot.lane.b32.xlu0 %v2272_v8, %s2702_s25  ;;  %v489_v48 = vpop.xlane.xlu1 %488  ;;  %v182_v8 = vld [vmem:[%s2687_s7 + $0x10] sm:$0xff]  ;;  %s2723_s25 = smov 48  }
 0x539   :  { %1976 = vrcp.f32 %v489_v48  ;;  %1779 = vmatmul.msk.f32.gmra.mxu2 %vm224_vm9, %v342_v47  ;;  %553 = vmatpush.msra.mxu0 %v182_v8 }
 0x53f   :  { %v1977_v49 = vpop.eup %1976 }
 0x540   :  { %v495_v50 = vmul.f32 %v1977_v49, %v1965_v19 }
 0x542   :  { %1788 = vmatmul.msk.f32.vlgmr.msra.gmra.mxu2 %vm224_vm9, %v495_v50 }
 0x597   :  { %v616_v53 = vpop.xlane.xlu0 %615 }
 0x598   :  { %1978 = vrcp.f32 %v616_v53 }
 0x59e   :  { %v1979_v59 = vpop.eup %1978 }
 0x59f   :  { %v619_v52 = vpop.xlane.xlu1 %618  ;;  %v622_v1 = vmul.f32 %v1979_v59, %v1967_v27  ;;  %v1932_v59 = vld [vmem:[%s2689_s9] ss:$0 sm:$0xff] }
 0x5a7   :  { %v492_v55 = vpop.xlane.xlu1 %491 }
 0x5a8   :  { %1980 = vrcp.f32 %v492_v55 }
 0x5a9   :  { %1982 = vrcp.f32 %v619_v52 }
 0x5aa   :  { %v1900_v58 = vpop.permute.xlu0 %1899 }
 0x5ab   :  { %v1901_v60 = vunpack.i.l.bf16 %v1900_v58  ;;  %v1902_v61 = vunpack.i.h.bf16 %v1900_v58 }
 0x5ad   :  { %650 = vmatpush.msra.mxu3 %v1901_v60 }
 0x5ae   :  { %v1981_v63 = vpop.eup %1980 }
 0x5af   :  { %651 = vmatpush.msra.mxu3 %v1902_v61  ;;  %v496_v3 = vmul.f32 %v1981_v63, %v1973_v42  ;;  %v1983_v5 = vpop.eup %1982  ;;  %v755_v42 = vld [vmem:[%s2691_s11 + $0x8] sm:$0xff] }
 0x5b0   :  { %1796 = vmatmul.msk.f32.vlgmr.msra.gmra.mxu3 %vm224_vm9, %v622_v1  ;;  %v623_v7 = vmul.f32 %v1983_v5, %v1969_v35  ;;  %v1933_v1 = vld [vmem:[%s2690_s10] ss:$0 sm:$0xff] }
 0x5b1   :  { %1789 = vmatmul.msk.f32.gmra.mxu2 %vm224_vm9, %v496_v3 }
 0x5b4   :  { %v372_v6 = vpop.f32.mrf.mxu2 }
 0x5b5   :  { %1780 = vmatmul.msk.f32.vlgmr.msrb.gmra.mxu0 %vm190_vm8, %v372_v6 }
 0x5b6   :  { %780 = vmatpush.msrb.mxu0 %v757_v40 }
 0x5b8   :  { %1797 = vmatmul.msk.f32.gmra.mxu3 %vm224_vm9, %v623_v7  ;;  %781 = vmatpush.msrb.mxu0 %v756_v41 }
 0x5ba   :  { %782 = vmatpush.msrb.mxu0 %v755_v42 }
 0x5bc   :  { %v375_v9 = vpop.f32.mrf.mxu2  ;;  %783 = vmatpush.msrb.mxu0 %v754_v43 }
 0x5bd   :  { %1781 = vmatmul.msk.f32.gmra.mxu0 %vm190_vm8, %v375_v9 }
 0x5c5   :  { %v526_v11 = vpop.f32.mrf.mxu2 }
 0x5c6   :  { %1790 = vmatmul.msk.f32.vlgmr.msra.gmra.mxu0 %vm190_vm8, %v526_v11 }
 0x632   :  { %v401_v15 = vpop.f32.mrf.mxu0 }
 0x633   :  { %v653_v12 = vpop.f32.mrf.mxu3  ;;  %v431_v18 = vadd.f32 %v2323_v56, %v401_v15  ;;  %v816_v15 = vld [vmem:[%s2693_s13 + $0x38] sm:$0xff] }
 0x634   :  { %v529_v13 = vpop.f32.mrf.mxu2  ;;  %1798 = vmatmul.msk.f32.vlgmr.msrb.gmra.mxu2 %vm190_vm8, %v653_v12  ;;  %836 = vmatpush.msrb.mxu1 %v816_v15 }
 0x635   :  { %1791 = vmatmul.msk.f32.gmra.mxu0 %vm190_vm8, %v529_v13 }
 0x63a   :  { %v404_v16 = vpop.f32.mrf.mxu0 }
 0x63b   :  { %v656_v14 = vpop.f32.mrf.mxu3  ;;  %v434_v25 = vadd.f32 %v2325_v57, %v404_v16  ;;  %v815_v16 = vld [vmem:[%s2693_s13 + $0x30] sm:$0xff] }
 0x63c   :  { %1799 = vmatmul.msk.f32.gmra.mxu2 %vm190_vm8, %v656_v14  ;;  %837 = vmatpush.msrb.mxu1 %v815_v16 }
 0x643   :  { %v555_v17 = vpop.f32.mrf.mxu0 }
 0x644   :  { %v561_v19 = vadd.f32 %v555_v17, %v431_v18  ;;  %v814_v17 = vld [vmem:[%s2693_s13 + $0x28] sm:$0xff]  ;;  %v813_v18 = vld [vmem:[%s2693_s13 + $0x20] sm:$0xff] }
 0x645   :  { %838 = vmatpush.msrb.mxu1 %v814_v17 }
 0x647   :  { %839 = vmatpush.msrb.mxu1 %v813_v18 }
 0x6b2   :  { %v558_v24 = vpop.f32.mrf.mxu0 }
 0x6b3   :  { %v562_v27 = vadd.f32 %v558_v24, %v434_v25 }
 0x6b7   :  { %v682_v20 = vpop.f32.mrf.mxu2 }
 0x6b8   :  { %v688_v21 = vadd.f32 %v682_v20, %v561_v19  ;;  %v812_v19 = vld [vmem:[%s2693_s13 + $0x18] sm:$0xff]  ;;  %v811_v20 = vld [vmem:[%s2693_s13 + $0x10] sm:$0xff] }
 0x6b9   :  { %840 = vmatpush.msrb.mxu1 %v812_v19 }
 0x6ba   :  { %v690_v23 = vadd.f32 %v688_v21, %v2198_v0  ;;  %v810_v21 = vld [vmem:[%s2693_s13 + $0x8] sm:$0xff] }
 0x6bb   :  { %841 = vmatpush.msrb.mxu1 %v811_v20 }
 0x6bc   :  { %v2370_v26 = vadd.f32 %v1931_v22, %v690_v23  ;;  %v1934_v23 = vld [vmem:[%s2692_s12] ss:$0 sm:$0xff] }
 0x6bd   :  { %842 = vmatpush.msrb.mxu1 %v810_v21 }
 0x6be   :  { %v700_v28 = vsel %vm79_vm0, %v2370_v26, 0.0 }
 0x6bf   :  { %701 = vadd.xlane.f32.xlu0 %v700_v28  ;;  %v685_v56 = vpop.f32.mrf.mxu2 }
 0x6c0   :  { %v689_v29 = vadd.f32 %v685_v56, %v562_v27 }
 0x6c2   :  { %v691_v30 = vadd.f32 %v689_v29, %v2205_v2 }
 0x6c4   :  { %v2375_v31 = vadd.f32 %v1931_v22, %v691_v30  ;;  %v809_v22 = vld [vmem:[%s2693_s13] sm:$0xff] }
 0x6c5   :  { %843 = vmatpush.msrb.mxu1 %v809_v22  ;;  %v1936_v22 = vld [vmem:[%s2683_s3 + $0x1] ss:$0 sm:$0xff] }
 0x6c6   :  { %v703_v32 = vsel %vm79_vm0, %v2375_v31, 0.0 }
 0x6c7   :  { %704 = vadd.xlane.f32.xlu2 %v703_v32 }
 0x732   :  { %v702_v0 = vpop.xlane.xlu0 %701 }
 0x733   :  { %v706_v57 = vmul.f32 %v702_v0, %v2209_v10 }
 0x735   :  { %v708_v33 = vsub.f32 %v2370_v26, %v706_v57 }
 0x737   :  { %v710_v34 = vmul.f32 %v708_v33, %v708_v33 }
 0x739   :  { %v712_v35 = vsel %vm79_vm0, %v710_v34, 0.0 }
 0x73a   :  { %713 = vadd.xlane.f32.xlu1 %v712_v35  ;;  %v705_v36 = vpop.xlane.xlu2 %704 }
 0x73b   :  { %v707_v37 = vmul.f32 %v705_v36, %v2209_v10 }
 0x73d   :  { %v709_v2 = vsub.f32 %v2375_v31, %v707_v37 }
 0x73f   :  { %v711_v38 = vmul.f32 %v709_v2, %v709_v2 }
 0x741   :  { %v715_v39 = vsel %vm79_vm0, %v711_v38, 0.0 }
 0x742   :  { %716 = vadd.xlane.f32.xlu1 %v715_v39 }
 0x7ad   :  { %v714_v44 = vpop.xlane.xlu1 %713 }
 0x7ae   :  { %v718_v45 = vmul.f32 %v714_v44, %v2209_v10  ;;  %v1935_v44 = vld [vmem:[%s2694_s14] ss:$0 sm:$0xff] }
 0x7b0   :  { %v720_v46 = vadd.f32 1e-05, %v718_v45 }
 0x7b2   :  { %1984 = vrsqrt.f32 %v720_v46  ;;  %vm728_vm11 = vweird.f32 %v720_v46 }
 0x7b5   :  { %v717_v47 = vpop.xlane.xlu1 %716 }
 0x7b6   :  { %v719_v48 = vmul.f32 %v717_v47, %v2209_v10 }
 0x7b8   :  { %v1985_v49 = vpop.eup %1984  ;;  %v721_v50 = vadd.f32 1e-05, %v719_v48 }
 0x7b9   :  { %v723_v51 = vmul.f32 %v1985_v49, %v720_v46  ;;  %vm729_vm10 = vweird.f32 %v1985_v49 }
 0x7ba   :  { %1986 = vrsqrt.f32 %v721_v50  ;;  %vm730_vm12 = vmor %vm728_vm11, %vm729_vm10  ;;  %vm738_vm14 = vweird.f32 %v721_v50 }
 0x7bb   :  { %v724_v52 = vmul.f32 %v1985_v49, %v723_v51 }
 0x7bd   :  { %v725_v53 = vmul.f32 0.5, %v724_v52 }
 0x7bf   :  { %v726_v8 = vsub.f32 1.5, %v725_v53 }
 0x7c0   :  { %v1987_v54 = vpop.eup %1986 }
 0x7c1   :  { %v727_v55 = vmul.f32 %v1985_v49, %v726_v8  ;;  %v733_v58 = vmul.f32 %v1987_v54, %v721_v50  ;;  %vm739_vm13 = vweird.f32 %v1987_v54 }
 0x7c2   :  { %vm740_vm15 = vmor %vm738_vm14, %vm739_vm13 }
 0x7c3   :  { %v731_v60 = vsel %vm730_vm12, %v1985_v49, %v727_v55  ;;  %v734_v61 = vmul.f32 %v1987_v54, %v733_v58 }
 0x7c4   :  { %v742_v63 = vmul.f32 %v731_v60, %v708_v33 }
 0x7c5   :  { %v735_v3 = vmul.f32 0.5, %v734_v61 }
 0x7c6   :  { %v747_v5 = vmul.f32 %v1932_v59, %v742_v63  ;;  %v1809_v63 = vld [vmem:[%s2685_s5 + $0x38] sm:$0xff] }
 0x7c7   :  { %v736_v6 = vsub.f32 1.5, %v735_v3  ;;  %939 = vmatpush.msrb.mxu3 %v1809_v63  ;;  %v1807_v3 = vld [vmem:[%s2685_s5 + $0x28] sm:$0xff] }
 0x7c8   :  { %v752_v7 = vadd.f32 %v1933_v1, %v747_v5  ;;  %v1806_v5 = vld [vmem:[%s2685_s5 + $0x20] sm:$0xff] }
 0x7c9   :  { %v737_v9 = vmul.f32 %v1987_v54, %v736_v6 }
 0x7ca   :  { %1800 = vmatmul.msk.f32.vlgmr.msrb.gmra.mxu0 %vm79_vm0, %v752_v7 }
 0x7cb   :  { %v741_v11 = vsel %vm740_vm15, %v1987_v54, %v737_v9 }
 0x7cc   :  { %v743_v12 = vmul.f32 %v741_v11, %v709_v2 }
 0x7ce   :  { %v748_v13 = vmul.f32 %v1932_v59, %v743_v12 }
 0x7d0   :  { %v753_v14 = vadd.f32 %v1933_v1, %v748_v13  ;;  %v1808_v1 = vld [vmem:[%s2685_s5 + $0x30] sm:$0xff] }
 0x7d1   :  { %940 = vmatpush.msrb.mxu3 %v1808_v1 }
 0x7d2   :  { %1801 = vmatmul.msk.f32.gmra.mxu0 %vm79_vm0, %v753_v14 }
 0x7d3   :  { %941 = vmatpush.msrb.mxu3 %v1807_v3  ;;  %v1813_v3 = vld [vmem:[%s2687_s7 + $0x20] sm:$0xff] }
 0x7d5   :  { %942 = vmatpush.msrb.mxu3 %v1806_v5 }
 0x847   :  { %v785_v24 = vpop.f32.mrf.mxu0 }
 0x848   :  { %v786_v25 = vadd.f32 %v1934_v23, %v785_v24 }
 0x84a   :  { %v793_v27 = vmul.f32 0.044715, %v786_v25  ;;  %v791_v2 = vmul.f32 0.5, %v786_v25 }
 0x84c   :  { %v795_v28 = vmul.f32 %v793_v27, %v786_v25  ;;  %v1937_v27 = vld [vmem:[%s2684_s4 + $0x1] ss:$0 sm:$0xff]  ;;  %s2718_s4 = smov 80  }
 0x84e   :  { %v797_v56 = vmul.f32 %v795_v28, %v786_v25 }
 0x84f   :  { %v788_v29 = vpop.f32.mrf.mxu0 }
 0x850   :  { %v799_v30 = vadd.f32 %v797_v56, %v786_v25  ;;  %v789_v32 = vadd.f32 %v1934_v23, %v788_v29 }
 0x852   :  { %v801_v0 = vmul.f32 0.7978846, %v799_v30  ;;  %v794_v57 = vmul.f32 0.044715, %v789_v32  ;;  %v792_v41 = vmul.f32 0.5, %v789_v32 }
 0x854   :  { %1988 = vtanh.f32 %v801_v0  ;;  %v796_v33 = vmul.f32 %v794_v57, %v789_v32 }
 0x856   :  { %v798_v34 = vmul.f32 %v796_v33, %v789_v32 }
 0x858   :  { %v800_v35 = vadd.f32 %v798_v34, %v789_v32 }
 0x85a   :  { %v1989_v36 = vpop.eup %1988  ;;  %v802_v37 = vmul.f32 0.7978846, %v800_v35  ;;  %v1938_v35 = vld [vmem:[%s2686_s6 + $0x1] ss:$0 sm:$0xff]  ;;  %s2719_s6 = smov 112  }
 0x85b   :  { %v805_v38 = vadd.f32 1.0, %v1989_v36 }
 0x85c   :  { %1990 = vtanh.f32 %v802_v37 }
 0x85d   :  { %v807_v39 = vmul.f32 %v805_v38, %v791_v2 }
 0x85f   :  { %1802 = vmatmul.msk.f32.vlgmr.msrb.gmra.mxu1 %vm821_vm1, %v807_v39 }
 0x862   :  { %v1991_v40 = vpop.eup %1990 }
 0x863   :  { %v806_v42 = vadd.f32 1.0, %v1991_v40 }
 0x865   :  { %v808_v43 = vmul.f32 %v806_v42, %v792_v41 }
 0x867   :  { %1803 = vmatmul.msk.f32.gmra.mxu1 %vm821_vm1, %v808_v43 }
 0x8dc   :  { %v845_v45 = vpop.f32.mrf.mxu1 }
 0x8dd   :  { %v846_v46 = vadd.f32 %v1935_v44, %v845_v45 }
 0x8df   :  { %v2440_v47 = vadd.f32 %v846_v46, %v2370_v26 }
 0x8e1   :  { %v857_v48 = vsel %vm79_vm0, %v2440_v47, 0.0 }
 0x8e2   :  { %858 = vadd.xlane.f32.xlu1 %v857_v48 }
 0x8e4   :  { %v848_v49 = vpop.f32.mrf.mxu1 }
 0x8e5   :  { %v849_v50 = vadd.f32 %v1935_v44, %v848_v49 }
 0x8e7   :  { %v2445_v51 = vadd.f32 %v849_v50, %v2375_v31 }
 0x8e9   :  { %v860_v52 = vsel %vm79_vm0, %v2445_v51, 0.0 }
 0x8ea   :  { %861 = vadd.xlane.f32.xlu1 %v860_v52 }
 0x955   :  { %v859_v53 = vpop.xlane.xlu1 %858 }
 0x956   :  { %v863_v8 = vmul.f32 %v859_v53, %v2209_v10 }
 0x958   :  { %v865_v54 = vsub.f32 %v2440_v47, %v863_v8 }
 0x95a   :  { %v867_v26 = vmul.f32 %v865_v54, %v865_v54 }
 0x95c   :  { %v869_v55 = vsel %vm79_vm0, %v867_v26, 0.0 }
 0x95d   :  { %870 = vadd.xlane.f32.xlu1 %v869_v55  ;;  %v862_v58 = vpop.xlane.xlu1 %861 }
 0x95e   :  { %v864_v59 = vmul.f32 %v862_v58, %v2209_v10 }
 0x960   :  { %v866_v60 = vsub.f32 %v2445_v51, %v864_v59 }
 0x962   :  { %v868_v31 = vmul.f32 %v866_v60, %v866_v60 }
 0x964   :  { %v872_v61 = vsel %vm79_vm0, %v868_v31, 0.0 }
 0x965   :  { %873 = vadd.xlane.f32.xlu1 %v872_v61 }
 0x9d0   :  { %v871_v6 = vpop.xlane.xlu1 %870 }
 0x9d1   :  { %v875_v7 = vmul.f32 %v871_v6, %v2209_v10 }
 0x9d3   :  { %v877_v9 = vadd.f32 1e-05, %v875_v7 }
 0x9d5   :  { %1992 = vrsqrt.f32 %v877_v9  ;;  %vm885_vm3 = vweird.f32 %v877_v9 }
 0x9d8   :  { %v874_v11 = vpop.xlane.xlu1 %873 }
 0x9d9   :  { %v876_v12 = vmul.f32 %v874_v11, %v2209_v10 }
 0x9db   :  { %v1993_v13 = vpop.eup %1992  ;;  %v878_v14 = vadd.f32 1e-05, %v876_v12 }
 0x9dc   :  { %v880_v15 = vmul.f32 %v1993_v13, %v877_v9  ;;  %vm886_vm2 = vweird.f32 %v1993_v13 }
 0x9dd   :  { %1994 = vrsqrt.f32 %v878_v14  ;;  %vm887_vm4 = vmor %vm885_vm3, %vm886_vm2  ;;  %vm895_vm6 = vweird.f32 %v878_v14 }
 0x9de   :  { %v881_v16 = vmul.f32 %v1993_v13, %v880_v15 }
 0x9e0   :  { %v882_v17 = vmul.f32 0.5, %v881_v16 }
 0x9e2   :  { %v883_v18 = vsub.f32 1.5, %v882_v17 }
 0x9e3   :  { %v1995_v19 = vpop.eup %1994 }
 0x9e4   :  { %v884_v20 = vmul.f32 %v1993_v13, %v883_v18  ;;  %v890_v21 = vmul.f32 %v1995_v19, %v878_v14  ;;  %vm896_vm5 = vweird.f32 %v1995_v19 }
 0x9e5   :  { %vm897_vm7 = vmor %vm895_vm6, %vm896_vm5 }
 0x9e6   :  { %v888_v23 = vsel %vm887_vm4, %v1993_v13, %v884_v20  ;;  %v891_v24 = vmul.f32 %v1995_v19, %v890_v21 }
 0x9e7   :  { %v899_v25 = vmul.f32 %v888_v23, %v865_v54 }
 0x9e8   :  { %v892_v28 = vmul.f32 0.5, %v891_v24  ;;  %v2040_v24 = vld [vmem:[%s2717_s24] sm:$0xff] }
 0x9e9   :  { %v904_v56 = vmul.f32 %v1936_v22, %v899_v25 }
 0x9ea   :  { %v893_v29 = vsub.f32 1.5, %v892_v28 }
 0x9eb   :  { %v909_v30 = vadd.f32 %v1937_v27, %v904_v56 }
 0x9ec   :  { %v894_v32 = vmul.f32 %v1995_v19, %v893_v29  ;;  %v2041_v29 = vld [vmem:[%s2717_s24 + $0x8] sm:$0xff]  ;;  %s2722_s24 = smov 56  }
 0x9ed   :  { %1811 = vmatmul.msk.f32.vlgmr.msrb.gmra.mxu3 %vm79_vm0, %v909_v30 }
 0x9ee   :  { %v898_v0 = vsel %vm897_vm7, %v1995_v19, %v894_v32 }
 0x9ef   :  { %v900_v57 = vmul.f32 %v898_v0, %v866_v60 }
 0x9f1   :  { %v905_v33 = vmul.f32 %v1936_v22, %v900_v57 }
 0x9f3   :  { %v910_v34 = vadd.f32 %v1937_v27, %v905_v33 }
 0x9f5   :  { %1812 = vmatmul.msk.f32.gmra.mxu3 %vm79_vm0, %v910_v34 }
 0xa70   :  { %v944_v36 = vpop.f32.mrf.mxu3 }
 0xa71   :  { %v945_v37 = vadd.f32 %v1938_v35, %v944_v36 }
 0xa73   :  { %959 = vrot.lane.b32.xlu0 %v945_v37, %s2084_s22  ;;  %v950_v41 = vmul.f32 0.35355338, %v945_v37 }
 0xa78   :  { %v947_v2 = vpop.f32.mrf.mxu3 }
 0xa79   :  { %v948_v38 = vadd.f32 %v1938_v35, %v947_v2 }
 0xa7b   :  { %961 = vrot.lane.b32.xlu2 %v948_v38, %s2084_s22  ;;  %v951_v42 = vmul.f32 0.35355338, %v948_v38  ;;  %v2490_v50 = vpack.i.bf16 %v945_v37, %v948_v38  ;;  %s2720_s22 = smov 72  }
 0xad5   :  { %v962_v39 = vpop.permute.xlu2 %961 }
 0xad6   :  { %1817 = vmatpush.xpose.msk.msra.mxu2 %vm190_vm8, %v962_v39 }
 0xae5   :  { %v960_v40 = vpop.permute.xlu0 %959 }
 0xae6   :  { %1818 = vmatpush.xpose.msk.msra.mxu2 %vm190_vm8, %v960_v40 }
 0xae9   :  { %1819 = vmatmul.msk.f32.vlgmr.msra.gmra.mxu2 %vm190_vm8, %v950_v41 }
 0xaf1   :  { %1820 = vmatmul.msk.f32.gmra.mxu2 %vm190_vm8, %v951_v42 }
 0xb6c   :  { %v990_v43 = vpop.f32.mrf.mxu2 }
 0xb6d   :  { %v991_v44 = vadd.f32 %v990_v43, %v2259_v62 }
 0xb6f   :  { %v996_v45 = vsel %vm224_vm9, %v991_v44, -inf }
 0xb70   :  { %997 = vmax.xlane.f32.xlu1 %v996_v45 }
 0xb74   :  { %v993_v46 = vpop.f32.mrf.mxu2 }
 0xb75   :  { %v994_v48 = vadd.f32 %v993_v46, %v2266_v4 }
 0xb77   :  { %v999_v49 = vsel %vm224_vm9, %v994_v48, -inf }
 0xb78   :  { %1000 = vmax.xlane.f32.xlu1 %v999_v49 }
 0xb91   :  { %1909 = vrot.lane.b32.xlu1 %v2490_v50, %s2085_s27 }
 0xb99   :  { %1059 = vrot.lane.b32.xlu1 %v948_v38, %s2086_s28 }
 0xba1   :  { %1057 = vrot.lane.b32.xlu1 %v945_v37, %s2086_s28 }
 0xba9   :  { %1055 = vrot.lane.b32.xlu1 %v951_v42, %s2087_s29 }
 0xbb1   :  { %1211 = vrot.lane.b32.xlu1 %v945_v37, %s2718_s4 }
 0xbb9   :  { %1207 = vrot.lane.b32.xlu1 %v950_v41, %s2719_s6 }
 0xbc1   :  { %1338 = vrot.lane.b32.xlu1 %v945_v37, %s2720_s22 }
 0xbc9   :  { %1336 = vrot.lane.b32.xlu1 %v951_v42, %s2721_s2 }
 0xbe3   :  { %v998_v62 = vpop.xlane.xlu1 %997 }
 0xbe4   :  { %v1002_v4 = vsub.f32 %v991_v44, %v998_v62 }
 0xbe6   :  { %v1004_v52 = vmul.f32 1.442695, %v1002_v4 }
 0xbe8   :  { %1996 = vpow2.f32 %v1004_v52 }
 0xbeb   :  { %v1001_v53 = vpop.xlane.xlu1 %1000 }
 0xbec   :  { %v1003_v8 = vsub.f32 %v994_v48, %v1001_v53 }
 0xbee   :  { %v1997_v54 = vpop.eup %1996  ;;  %v1006_v26 = vmul.f32 1.442695, %v1003_v8 }
 0xbef   :  { %v1008_v55 = vsel %vm224_vm9, %v1997_v54, 0.0 }
 0xbf0   :  { %1998 = vpow2.f32 %v1006_v26  ;;  %1009 = vadd.xlane.f32.xlu0 %v1008_v55 }
 0xbf6   :  { %v1999_v58 = vpop.eup %1998 }
 0xbf7   :  { %v1011_v59 = vsel %vm224_vm9, %v1999_v58, 0.0 }
 0xbf8   :  { %1012 = vadd.xlane.f32.xlu2 %v1011_v59 }
 0xc03   :  { %v1910_v60 = vpop.permute.xlu1 %1909 }
 0xc04   :  { %v1911_v31 = vunpack.i.l.bf16 %v1910_v60  ;;  %1053 = vrot.lane.b32.xlu0 %v950_v41, %s2087_s29  ;;  %v1912_v61 = vunpack.i.h.bf16 %v1910_v60 }
 0xc06   :  { %1044 = vmatpush.msra.mxu0 %v1911_v31 }
 0xc08   :  { %1045 = vmatpush.msra.mxu0 %v1912_v61 }
 0xc0a   :  { %1199 = vmatpush.msrb.mxu0 %v1813_v3 }
 0xc0b   :  { %v1060_v63 = vpop.permute.xlu1 %1059 }
 0xc0c   :  { %1340 = vrot.lane.b32.xlu0 %v948_v38, %s2720_s22  ;;  %1823 = vmatpush.xpose.msk.msra.mxu1 %vm190_vm8, %v1060_v63 }
 0xc10   :  { %1213 = vrot.lane.b32.xlu2 %v948_v38, %s2718_s4 }
 0xc13   :  { %v1058_v1 = vpop.permute.xlu1 %1057 }
 0xc14   :  { %1334 = vrot.lane.b32.xlu0 %v950_v41, %s2721_s2  ;;  %1824 = vmatpush.xpose.msk.msra.mxu1 %vm190_vm8, %v1058_v1 }
 0xc18   :  { %1209 = vrot.lane.b32.xlu2 %v951_v42, %s2719_s6 }
 0xc1b   :  { %v1056_v6 = vpop.permute.xlu1 %1055 }
 0xc23   :  { %v1212_v12 = vpop.permute.xlu1 %1211 }
 0xc2b   :  { %v1208_v17 = vpop.permute.xlu1 %1207 }
 0xc33   :  { %v1339_v19 = vpop.permute.xlu1 %1338 }
 0xc3b   :  { %v1337_v0 = vpop.permute.xlu1 %1336 }
 0xc63   :  { %v1010_v5 = vpop.xlane.xlu0 %1009 }
 0xc64   :  { %2000 = vrcp.f32 %v1010_v5 }
 0xc6a   :  { %v2001_v7 = vpop.eup %2000 }
 0xc6b   :  { %v1016_v9 = vmul.f32 %v2001_v7, %v1997_v54  ;;  %v1013_v11 = vpop.xlane.xlu2 %1012 }
 0xc6c   :  { %2002 = vrcp.f32 %v1013_v11 }
 0xc6d   :  { %1821 = vmatmul.msk.f32.vlgmr.msra.gmra.mxu0 %vm224_vm9, %v1016_v9 }
 0xc72   :  { %v2003_v13 = vpop.eup %2002 }
 0xc73   :  { %v1214_v14 = vpop.permute.xlu2 %1213  ;;  %v1017_v15 = vmul.f32 %v2003_v13, %v1999_v58 }
 0xc74   :  { %1833 = vmatpush.xpose.msk.msrb.mxu1 %vm190_vm8, %v1214_v14 }
 0xc75   :  { %1822 = vmatmul.msk.f32.gmra.mxu0 %vm224_vm9, %v1017_v15 }
 0xc76   :  { %v1054_v16 = vpop.permute.xlu0 %1053 }
 0xc77   :  { %1825 = vmatmul.msk.f32.vlgmr.msra.gmra.mxu1 %vm190_vm8, %v1054_v16 }
 0xc78   :  { %1834 = vmatpush.xpose.msk.msrb.mxu1 %vm190_vm8, %v1212_v12 }
 0xc7b   :  { %v1210_v20 = vpop.permute.xlu2 %1209 }
 0xc7e   :  { %v1341_v18 = vpop.permute.xlu0 %1340 }
 0xc7f   :  { %1826 = vmatmul.msk.f32.gmra.mxu1 %vm190_vm8, %v1056_v6  ;;  %1841 = vmatpush.xpose.msk.msra.mxu0 %vm190_vm8, %v1341_v18 }
 0xc83   :  { %1842 = vmatpush.xpose.msk.msra.mxu0 %vm190_vm8, %v1339_v19 }
 0xc86   :  { %v1335_v28 = vpop.permute.xlu0 %1334 }
 0xc87   :  { %1835 = vmatmul.msk.f32.vlgmr.msrb.gmra.mxu1 %vm190_vm8, %v1208_v17 }
 0xc8f   :  { %1836 = vmatmul.msk.f32.gmra.mxu1 %vm190_vm8, %v1210_v20 }
 0xcea   :  { %v1047_v21 = vpop.f32.mrf.mxu0 }
 0xceb   :  { %1831 = vmatmul.msk.f32.vlgmr.msrb.gmra.mxu0 %vm190_vm8, %v1047_v21 }
 0xcf2   :  { %v1050_v22 = vpop.f32.mrf.mxu0 }
 0xcf3   :  { %1832 = vmatmul.msk.f32.gmra.mxu0 %vm190_vm8, %v1050_v22 }
 0xcf4   :  { %v1086_v23 = vpop.f32.mrf.mxu1 }
 0xcf5   :  { %v1087_v25 = vadd.f32 %v2040_v24, %v1086_v23 }
 0xcf7   :  { %v1092_v27 = vsel %vm224_vm9, %v1087_v25, -inf }
 0xcf8   :  { %1093 = vmax.xlane.f32.xlu2 %v1092_v27 }
 0xcfb   :  { %1843 = vmatmul.msk.f32.vlgmr.msra.gmra.mxu0 %vm190_vm8, %v1335_v28 }
 0xcfc   :  { %v1089_v56 = vpop.f32.mrf.mxu1 }
 0xcfd   :  { %v1090_v30 = vadd.f32 %v2041_v29, %v1089_v56 }
 0xcff   :  { %v1095_v32 = vsel %vm224_vm9, %v1090_v30, -inf }
 0xd00   :  { %1096 = vmax.xlane.f32.xlu0 %v1095_v32 }
 0xd03   :  { %1844 = vmatmul.msk.f32.gmra.mxu0 %vm190_vm8, %v1337_v0 }
 0xd04   :  { %v1240_v57 = vpop.f32.mrf.mxu1 }
 0xd05   :  { %v1241_v33 = vadd.f32 %v2040_v24, %v1240_v57 }
 0xd07   :  { %v1246_v34 = vsel %vm224_vm9, %v1241_v33, -inf }
 0xd08   :  { %1247 = vmax.xlane.f32.xlu1 %v1246_v34 }
 0xd0c   :  { %v1243_v35 = vpop.f32.mrf.mxu1 }
 0xd0d   :  { %v1244_v36 = vadd.f32 %v2041_v29, %v1243_v35 }
 0xd0f   :  { %v1249_v37 = vsel %vm224_vm9, %v1244_v36, -inf }
 0xd10   :  { %1250 = vmax.xlane.f32.xlu2 %v1249_v37 }
 0xd68   :  { %v2537_v2 = vpop.f32.mrf.mxu0 }
 0xd6b   :  { %v1094_v38 = vpop.xlane.xlu2 %1093 }
 0xd6c   :  { %v1098_v39 = vsub.f32 %v1087_v25, %v1094_v38 }
 0xd6e   :  { %v1100_v40 = vmul.f32 1.442695, %v1098_v39 }
 0xd70   :  { %2004 = vpow2.f32 %v1100_v40  ;;  %v2539_v41 = vpop.f32.mrf.mxu0 }
 0xd73   :  { %v1097_v42 = vpop.xlane.xlu0 %1096 }
 0xd74   :  { %v1099_v43 = vsub.f32 %v1090_v30, %v1097_v42  ;;  %v1815_v42 = vld [vmem:[%s2687_s7 + $0x30] sm:$0xff] }
 0xd76   :  { %v2005_v44 = vpop.eup %2004  ;;  %v1102_v45 = vmul.f32 1.442695, %v1099_v43 }
 0xd77   :  { %v1104_v46 = vsel %vm224_vm9, %v2005_v44, 0.0 }
 0xd78   :  { %2006 = vpow2.f32 %v1102_v45  ;;  %1105 = vadd.xlane.f32.xlu1 %v1104_v46  ;;  %v1367_v48 = vpop.f32.mrf.mxu0 }
 0xd79   :  { %v1368_v49 = vadd.f32 %v2040_v24, %v1367_v48 }
 0xd7b   :  { %v1248_v62 = vpop.xlane.xlu1 %1247  ;;  %v1373_v4 = vsel %vm224_vm9, %v1368_v49, -inf }
 0xd7c   :  { %v1252_v52 = vsub.f32 %v1241_v33, %v1248_v62  ;;  %1374 = vmax.xlane.f32.xlu0 %v1373_v4  ;;  %v1816_v62 = vld [vmem:[%s2687_s7 + $0x38] sm:$0xff] }
 0xd7e   :  { %v2007_v53 = vpop.eup %2006  ;;  %v1254_v8 = vmul.f32 1.442695, %v1252_v52 }
 0xd7f   :  { %v1107_v54 = vsel %vm224_vm9, %v2007_v53, 0.0 }
 0xd80   :  { %2008 = vpow2.f32 %v1254_v8  ;;  %1108 = vadd.xlane.f32.xlu2 %v1107_v54  ;;  %v1370_v26 = vpop.f32.mrf.mxu0 }
 0xd81   :  { %v1371_v55 = vadd.f32 %v2041_v29, %v1370_v26 }
 0xd83   :  { %v1251_v58 = vpop.xlane.xlu2 %1250  ;;  %v1376_v63 = vsel %vm224_vm9, %v1371_v55, -inf }
 0xd84   :  { %v1253_v59 = vsub.f32 %v1244_v36, %v1251_v58  ;;  %v1814_v36 = vld [vmem:[%s2687_s7 + $0x28] sm:$0xff] }
 0xd85   :  { %1170 = vmatpush.msrb.mxu2 %v1814_v36 }
 0xd86   :  { %v2009_v60 = vpop.eup %2008  ;;  %v1256_v31 = vmul.f32 1.442695, %v1253_v59 }
 0xd87   :  { %v1258_v61 = vsel %vm224_vm9, %v2009_v60, 0.0  ;;  %1324 = vmatpush.msra.mxu2 %v1815_v42 }
 0xd88   :  { %2010 = vpow2.f32 %v1256_v31  ;;  %1259 = vadd.xlane.f32.xlu1 %v1258_v61  ;;  %1377 = vmax.xlane.f32.xlu2 %v1376_v63 }
 0xd8e   :  { %v2011_v1 = vpop.eup %2010 }
 0xd8f   :  { %v1261_v3 = vsel %vm224_vm9, %v2011_v1, 0.0 }
 0xd90   :  { %1262 = vadd.xlane.f32.xlu1 %v1261_v3  ;;  %1914 = vrot.lane.b32.xlu0 %v2490_v50, %s2722_s24 }
 0xda0   :  { %1919 = vrot.lane.b32.xlu2 %v2490_v50, %s2723_s25 }
 0xda9   :  { %1924 = vrot.lane.b32.xlu1 %v2490_v50, %s2724_s20 }
 0xdeb   :  { %v1106_v12 = vpop.xlane.xlu1 %1105 }
 0xdef   :  { %v1375_v5 = vpop.xlane.xlu0 %1374 }
 0xdf0   :  { %v1379_v6 = vsub.f32 %v1368_v49, %v1375_v5 }
 0xdf2   :  { %v1381_v7 = vmul.f32 1.442695, %v1379_v6 }
 0xdf3   :  { %v1109_v9 = vpop.xlane.xlu2 %1108 }
 0xdf4   :  { %2012 = vpow2.f32 %v1381_v7 }
 0xdf5   :  { %2014 = vrcp.f32 %v1106_v12 }
 0xdfa   :  { %v2013_v11 = vpop.eup %2012 }
 0xdfb   :  { %v1378_v13 = vpop.xlane.xlu2 %1377  ;;  %v1385_v14 = vsel %vm224_vm9, %v2013_v11, 0.0  ;;  %v2015_v18 = vpop.eup %2014 }
 0xdfc   :  { %v1380_v15 = vsub.f32 %v1371_v55, %v1378_v13  ;;  %1386 = vadd.xlane.f32.xlu0 %v1385_v14  ;;  %v1112_v22 = vmul.f32 %v2015_v18, %v2005_v44  ;;  %v1260_v25 = vpop.xlane.xlu1 %1259 }
 0xdfe   :  { %v1383_v16 = vmul.f32 1.442695, %v1380_v15 }
 0xe00   :  { %2016 = vpow2.f32 %v1383_v16 }
 0xe01   :  { %2018 = vrcp.f32 %v1109_v9 }
 0xe02   :  { %v1915_v17 = vpop.permute.xlu0 %1914  ;;  %2020 = vrcp.f32 %v1260_v25 }
 0xe03   :  { %v1916_v19 = vunpack.i.l.bf16 %v1915_v17  ;;  %v1920_v20 = vpop.permute.xlu2 %1919  ;;  %v1917_v50 = vunpack.i.h.bf16 %v1915_v17 }
 0xe04   :  { %v1921_v23 = vunpack.i.l.bf16 %v1920_v20  ;;  %v1922_v27 = vunpack.i.h.bf16 %v1920_v20  ;;  %v1263_v29 = vpop.xlane.xlu1 %1262  ;;  %v1854_v20 = vld [vmem:[%s2691_s11 + $0x30] sm:$0xff] }
 0xe05   :  { %1140 = vmatpush.msra.mxu3 %v1916_v19  ;;  %2022 = vrcp.f32 %v1263_v29  ;;  %v1855_v19 = vld [vmem:[%s2691_s11 + $0x38] sm:$0xff] }
 0xe06   :  { %v2017_v21 = vpop.eup %2016 }
 0xe07   :  { %1141 = vmatpush.msra.mxu3 %v1917_v50  ;;  %v1388_v24 = vsel %vm224_vm9, %v2017_v21, 0.0  ;;  %v2019_v28 = vpop.eup %2018  ;;  %v1853_v50 = vld [vmem:[%s2691_s11 + $0x28] sm:$0xff] }
 0xe08   :  { %1389 = vadd.xlane.f32.xlu2 %v1388_v24  ;;  %1827 = vmatmul.msk.f32.vlgmr.msra.gmra.mxu3 %vm224_vm9, %v1112_v22  ;;  %v1113_v56 = vmul.f32 %v2019_v28, %v2007_v53  ;;  %v2021_v30 = vpop.eup %2020 }
 0xe09   :  { %1294 = vmatpush.msrb.mxu3 %v1921_v23  ;;  %v1266_v32 = vmul.f32 %v2021_v30, %v2009_v60  ;;  %v1939_v60 = vld [vmem:[%s2688_s8 + $0x1] ss:$0 sm:$0xff] }
 0xe0b   :  { %1295 = vmatpush.msrb.mxu3 %v1922_v27  ;;  %v2023_v0 = vpop.eup %2022 }
 0xe0c   :  { %v1267_v35 = vmul.f32 %v2023_v0, %v2011_v1 }
 0xe0d   :  { %1451 = vmatpush.msra.mxu3 %v1816_v62 }
 0xe10   :  { %1828 = vmatmul.msk.f32.gmra.mxu3 %vm224_vm9, %v1113_v56 }
 0xe18   :  { %1837 = vmatmul.msk.f32.vlgmr.msrb.gmra.mxu3 %vm224_vm9, %v1266_v32 }
 0xe1b   :  { %v1925_v57 = vpop.permute.xlu1 %1924 }
 0xe1c   :  { %v1926_v33 = vunpack.i.l.bf16 %v1925_v57  ;;  %v1927_v34 = vunpack.i.h.bf16 %v1925_v57 }
 0xe1e   :  { %1421 = vmatpush.msra.mxu1 %v1926_v33  ;;  %v1940_v33 = vld [vmem:[%s2689_s9 + $0x1] ss:$0 sm:$0xff] }
 0xe20   :  { %1838 = vmatmul.msk.f32.gmra.mxu3 %vm224_vm9, %v1267_v35  ;;  %1422 = vmatpush.msra.mxu1 %v1927_v34 }
 0xe6f   :  { %v1387_v37 = vpop.xlane.xlu0 %1386 }
 0xe70   :  { %2024 = vrcp.f32 %v1387_v37  ;;  %v1941_v37 = vld [vmem:[%s2690_s10 + $0x1] ss:$0 sm:$0xff] }
 0xe76   :  { %v2025_v38 = vpop.eup %2024 }
 0xe77   :  { %v1393_v39 = vmul.f32 %v2025_v38, %v2013_v11 }
 0xe79   :  { %1845 = vmatmul.msk.f32.vlgmr.msra.gmra.mxu1 %vm224_vm9, %v1393_v39 }
 0xe7b   :  { %v1390_v40 = vpop.xlane.xlu2 %1389 }
 0xe7c   :  { %2026 = vrcp.f32 %v1390_v40 }
 0xe82   :  { %v2027_v43 = vpop.eup %2026 }
 0xe83   :  { %v1394_v44 = vmul.f32 %v2027_v43, %v2017_v21  ;;  %v1852_v21 = vld [vmem:[%s2691_s11 + $0x20] sm:$0xff] }
 0xe85   :  { %1846 = vmatmul.msk.f32.gmra.mxu1 %vm224_vm9, %v1394_v44 }
 0xe8b   :  { %v1143_v45 = vpop.f32.mrf.mxu3 }
 0xe8c   :  { %1829 = vmatmul.msk.f32.vlgmr.msrb.gmra.mxu2 %vm190_vm8, %v1143_v45 }
 0xe8d   :  { %1556 = vmatpush.msrb.mxu2 %v1855_v19 }
 0xe8f   :  { %1557 = vmatpush.msrb.mxu2 %v1854_v20 }
 0xe91   :  { %1558 = vmatpush.msrb.mxu2 %v1853_v50  ;;  %v1630_v50 = vlaneseq }
 0xe93   :  { %v1146_v46 = vpop.f32.mrf.mxu3  ;;  %1559 = vmatpush.msrb.mxu2 %v1852_v21  ;;  %v1631_v21 = vshrl.u32 %v1630_v50, 7 }
 0xe94   :  { %1830 = vmatmul.msk.f32.gmra.mxu2 %vm190_vm8, %v1146_v46 }
 0xe95   :  { %vm1635_vm15 = vcmp.eq.s32.totalorder %v1631_v21, 0  ;;  %vm1643_vm3 = vcmp.eq.s32.totalorder %v1631_v21, 1 }
 0xe9b   :  { %v1297_v48 = vpop.f32.mrf.mxu3 }
 0xe9c   :  { %1839 = vmatmul.msk.f32.vlgmr.msra.gmra.mxu2 %vm190_vm8, %v1297_v48 }
 0xea3   :  { %v1300_v49 = vpop.f32.mrf.mxu3 }
 0xea4   :  { %1840 = vmatmul.msk.f32.gmra.mxu2 %vm190_vm8, %v1300_v49 }
 0xef6   :  { %v1424_v4 = vpop.f32.mrf.mxu1 }
 0xef7   :  { %1847 = vmatmul.msk.f32.vlgmr.msra.gmra.mxu3 %vm190_vm8, %v1424_v4  ;;  %v1866_v4 = vld [vmem:[%s2693_s13 + $0x78] sm:$0xff] }
 0xef8   :  { %1613 = vmatpush.msrb.mxu0 %v1866_v4 }
 0xf02   :  { %v1427_v52 = vpop.f32.mrf.mxu1 }
 0xf03   :  { %1848 = vmatmul.msk.f32.gmra.mxu3 %vm190_vm8, %v1427_v52  ;;  %v1865_v52 = vld [vmem:[%s2693_s13 + $0x70] sm:$0xff] }
 0xf04   :  { %1614 = vmatpush.msrb.mxu0 %v1865_v52 }
 0xf0f   :  { %v1172_v53 = vpop.f32.mrf.mxu2 }
 0xf10   :  { %v1202_v26 = vadd.f32 %v2537_v2, %v1172_v53  ;;  %v1864_v53 = vld [vmem:[%s2693_s13 + $0x68] sm:$0xff] }
 0xf11   :  { %1615 = vmatpush.msrb.mxu0 %v1864_v53 }
 0xf17   :  { %v1175_v8 = vpop.f32.mrf.mxu2 }
 0xf18   :  { %v1205_v3 = vadd.f32 %v2539_v41, %v1175_v8  ;;  %v1863_v8 = vld [vmem:[%s2693_s13 + $0x60] sm:$0xff] }
 0xf19   :  { %1616 = vmatpush.msrb.mxu0 %v1863_v8 }
 0xf1f   :  { %v1326_v54 = vpop.f32.mrf.mxu2 }
 0xf20   :  { %v1332_v55 = vadd.f32 %v1326_v54, %v1202_v26  ;;  %v1862_v54 = vld [vmem:[%s2693_s13 + $0x58] sm:$0xff]  ;;  %v1861_v26 = vld [vmem:[%s2693_s13 + $0x50] sm:$0xff] }
 0xf21   :  { %1617 = vmatpush.msrb.mxu0 %v1862_v54  ;;  %v1944_v54 = vld [vmem:[%s2695_s15] ss:$0 sm:$0xff]  ;;  %s2096_s15 = smov [#allocation5]  }
 0xf23   :  { %1618 = vmatpush.msrb.mxu0 %v1861_v26 }
 0xf27   :  { %v1329_v1 = vpop.f32.mrf.mxu2 }
 0xf28   :  { %v1333_v5 = vadd.f32 %v1329_v1, %v1205_v3 }
 0xf7a   :  { %v1453_v58 = vpop.f32.mrf.mxu3 }
 0xf7b   :  { %v1459_v59 = vadd.f32 %v1453_v58, %v1332_v55  ;;  %v1860_v55 = vld [vmem:[%s2693_s13 + $0x48] sm:$0xff]  ;;  %v1859_v58 = vld [vmem:[%s2693_s13 + $0x40] sm:$0xff]  ;;  %s1634_s13 = sld [smem:[#allocation2]] }
 0xf7c   :  { %1619 = vmatpush.msrb.mxu0 %v1860_v55 }
 0xf7d   :  { %v1461_v31 = vadd.f32 %v1459_v59, %v2440_v47  ;;  %v1942_v59 = vld [vmem:[%s2692_s12 + $0x1] ss:$0 sm:$0xff]  ;;  %s1870_s12 = sld [smem:[#allocation2 + $0x1]] }
 0xf7e   :  { %1620 = vmatpush.msrb.mxu0 %v1859_v58 }
 0xf7f   :  { %v2581_v61 = vadd.f32 %v1939_v60, %v1461_v31 }
 0xf81   :  { %v1474_v63 = vsel %vm79_vm0, %v2581_v61, 0.0 }
 0xf82   :  { %1475 = vadd.xlane.f32.xlu1 %v1474_v63 }
 0xf83   :  { %s1642_s29 = sadd.s32 8, %s1870_s12 }
 0xf86   :  { %v1456_v2 = vpop.f32.mrf.mxu3 }
 0xf87   :  { %v1460_v6 = vadd.f32 %v1456_v2, %v1333_v5 }
 0xf89   :  { %v1462_v7 = vadd.f32 %v1460_v6, %v2445_v51 }
 0xf8b   :  { %v2587_v9 = vadd.f32 %v1939_v60, %v1462_v7 }
 0xf8d   :  { %v1477_v11 = vsel %vm79_vm0, %v2587_v9, 0.0 }
 0xf8e   :  { %1478 = vadd.xlane.f32.xlu0 %v1477_v11 }
 0xff5   :  { %v1476_v47 = vpop.xlane.xlu1 %1475 }
 0xff6   :  { %v1480_v12 = vmul.f32 %v1476_v47, %v2209_v10 }
 0xff8   :  { %v1482_v13 = vsub.f32 %v2581_v61, %v1480_v12 }
 0xffa   :  { %v1484_v14 = vmul.f32 %v1482_v13, %v1482_v13 }
 0xffc   :  { %v1486_v15 = vsel %vm79_vm0, %v1484_v14, 0.0 }
 0xffd   :  { %1487 = vadd.xlane.f32.xlu0 %v1486_v15 }
0x1001   :  { %v1479_v41 = vpop.xlane.xlu0 %1478 }
0x1002   :  { %v1481_v16 = vmul.f32 %v1479_v41, %v2209_v10 }
0x1004   :  { %v1483_v51 = vsub.f32 %v2587_v9, %v1481_v16 }
0x1006   :  { %v1485_v17 = vmul.f32 %v1483_v51, %v1483_v51 }
0x1008   :  { %v1489_v18 = vsel %vm79_vm0, %v1485_v17, 0.0 }
0x1009   :  { %1490 = vadd.xlane.f32.xlu0 %v1489_v18 }
0x1070   :  { %v1488_v22 = vpop.xlane.xlu0 %1487 }
0x1071   :  { %v1492_v23 = vmul.f32 %v1488_v22, %v2209_v10  ;;  %v1633_v22 = vand.u32 127, %v1630_v50 }
0x1073   :  { %v1494_v24 = vadd.f32 1e-05, %v1492_v23  ;;  %v1636_v23 = vstv %s1634_s13 }
0x1074   :  { %vm1637_vm2 = vcmp.eq.s32.totalorder %v1633_v22, %v1636_v23 }
0x1075   :  { %2028 = vrsqrt.f32 %v1494_v24  ;;  %vm1502_vm10 = vweird.f32 %v1494_v24  ;;  %vm1638_vm5 = vmand %vm1635_vm15, %vm1637_vm2 }
0x107b   :  { %v2029_v25 = vpop.eup %2028 }
0x107c   :  { %v1497_v27 = vmul.f32 %v2029_v25, %v1494_v24  ;;  %v1491_v28 = vpop.xlane.xlu0 %1490  ;;  %vm1503_vm8 = vweird.f32 %v2029_v25 }
0x107d   :  { %v1493_v56 = vmul.f32 %v1491_v28, %v2209_v10  ;;  %vm1504_vm11 = vmor %vm1502_vm10, %vm1503_vm8  ;;  %vm1733_vm10 = vcmask 123904  }
0x107e   :  { %v1498_v29 = vmul.f32 %v2029_v25, %v1497_v27  ;;  %v1943_v27 = vld [vmem:[%s2694_s14 + $0x1] ss:$0 sm:$0xff] }
0x107f   :  { %v1495_v30 = vadd.f32 1e-05, %v1493_v56 }
0x1080   :  { %v1499_v32 = vmul.f32 0.5, %v1498_v29 }
0x1081   :  { %2030 = vrsqrt.f32 %v1495_v30  ;;  %vm1512_vm13 = vweird.f32 %v1495_v30 }
0x1082   :  { %v1500_v0 = vsub.f32 1.5, %v1499_v32 }
0x1084   :  { %v1501_v57 = vmul.f32 %v2029_v25, %v1500_v0 }
0x1086   :  { %v1505_v34 = vsel %vm1504_vm11, %v2029_v25, %v1501_v57  ;;  %v1644_v25 = vstv %s1642_s29 }
0x1087   :  { %v2031_v35 = vpop.eup %2030  ;;  %v1516_v36 = vmul.f32 %v1505_v34, %v1482_v13  ;;  %vm1645_vm4 = vcmp.eq.s32.totalorder %v1633_v22, %v1644_v25 }
0x1088   :  { %v1507_v38 = vmul.f32 %v2031_v35, %v1495_v30  ;;  %vm1513_vm12 = vweird.f32 %v2031_v35  ;;  %vm1646_vm6 = vmand %vm1643_vm3, %vm1645_vm4  ;;  %v2095_v30 = vmov 0.0  }
0x1089   :  { %v1521_v39 = vmul.f32 %v1940_v33, %v1516_v36  ;;  %vm1514_vm14 = vmor %vm1512_vm13, %vm1513_vm12  ;;  %v1639_v32 = vsel %vm1638_vm5, 1.0, %v2095_v30  ;;  %v1647_v0 = vsel %vm1646_vm6, 1.0, %v2095_v30 }
0x108a   :  { %v1508_v40 = vmul.f32 %v2031_v35, %v1507_v38 }
0x108b   :  { %v1526_v42 = vadd.f32 %v1941_v37, %v1521_v39 }
0x108c   :  { %v1509_v43 = vmul.f32 0.5, %v1508_v40 }
0x108d   :  { %1857 = vmatmul.msk.f32.vlgmr.msrb.gmra.mxu2 %vm79_vm0, %v1526_v42 }
0x108e   :  { %v1510_v44 = vsub.f32 1.5, %v1509_v43  ;;  %v1706_v43 = vld [vmem:[%s2697_s17 + $0x8] sm:$0xff] }
0x1090   :  { %v1511_v45 = vmul.f32 %v2031_v35, %v1510_v44  ;;  %v1705_v44 = vld [vmem:[%s2697_s17] sm:$0xff] }
0x1092   :  { %v1515_v46 = vsel %vm1514_vm14, %v2031_v35, %v1511_v45 }
0x1093   :  { %v1517_v48 = vmul.f32 %v1515_v46, %v1483_v51 }
0x1095   :  { %v1522_v49 = vmul.f32 %v1940_v33, %v1517_v48  ;;  %v1648_v33 = vadd.f32 %v1647_v0, %v1639_v32 }
0x1097   :  { %v1527_v62 = vadd.f32 %v1941_v37, %v1522_v49 }
0x1099   :  { %1858 = vmatmul.msk.f32.gmra.mxu2 %vm79_vm0, %v1527_v62 }
0x1110   :  { %v1561_v60 = vpop.f32.mrf.mxu2 }
0x1111   :  { %v1562_v31 = vadd.f32 %v1942_v59, %v1561_v60 }
0x1113   :  { %v1569_v63 = vmul.f32 0.044715, %v1562_v31  ;;  %v1567_v14 = vmul.f32 0.5, %v1562_v31 }
0x1115   :  { %v1571_v1 = vmul.f32 %v1569_v63, %v1562_v31 }
0x1117   :  { %v1573_v3 = vmul.f32 %v1571_v1, %v1562_v31 }
0x1119   :  { %v1575_v5 = vadd.f32 %v1573_v3, %v1562_v31 }
0x111b   :  { %v1577_v2 = vmul.f32 0.7978846, %v1575_v5 }
0x111c   :  { %v1564_v6 = vpop.f32.mrf.mxu2 }
0x111d   :  { %2032 = vtanh.f32 %v1577_v2  ;;  %v1565_v7 = vadd.f32 %v1942_v59, %v1564_v6 }
0x111f   :  { %v1570_v11 = vmul.f32 0.044715, %v1565_v7  ;;  %v1568_v18 = vmul.f32 0.5, %v1565_v7 }
0x1121   :  { %v1572_v47 = vmul.f32 %v1570_v11, %v1565_v7 }
0x1123   :  { %v2033_v12 = vpop.eup %2032  ;;  %v1574_v13 = vmul.f32 %v1572_v47, %v1565_v7 }
0x1124   :  { %v1581_v15 = vadd.f32 1.0, %v2033_v12 }
0x1125   :  { %v1576_v41 = vadd.f32 %v1574_v13, %v1565_v7 }
0x1126   :  { %v1583_v16 = vmul.f32 %v1581_v15, %v1567_v14 }
0x1127   :  { %v1578_v51 = vmul.f32 0.7978846, %v1576_v41 }
0x1128   :  { %1868 = vmatmul.msk.f32.vlgmr.msrb.gmra.mxu0 %vm821_vm1, %v1583_v16 }
0x1129   :  { %2034 = vtanh.f32 %v1578_v51 }
0x112f   :  { %v2035_v17 = vpop.eup %2034 }
0x1130   :  { %v1582_v19 = vadd.f32 1.0, %v2035_v17 }
0x1132   :  { %v1584_v20 = vmul.f32 %v1582_v19, %v1568_v18 }
0x1134   :  { %1869 = vmatmul.msk.f32.gmra.mxu0 %vm821_vm1, %v1584_v20  ;;  %vm1674_vm1 = vcmask 254976  }
0x11a5   :  { %v1622_v24 = vpop.f32.mrf.mxu0 }
0x11a6   :  { %v1623_v56 = vadd.f32 %v1943_v27, %v1622_v24 }
0x11a8   :  { %v1628_v34 = vadd.f32 %v1623_v56, %v2581_v61  ;;  %v1707_v61 = vld [vmem:[%s2697_s17 + $0x10] sm:$0xff] }
0x11b1   :  { %v1625_v28 = vpop.f32.mrf.mxu0 }
0x11b2   :  { %v1626_v29 = vadd.f32 %v1943_v27, %v1625_v28 }
0x11b4   :  { %v1629_v57 = vadd.f32 %v1626_v29, %v2587_v9  ;;  %v1708_v9 = vld [vmem:[%s2697_s17 + $0x18] sm:$0xff] }
0x11b5   :  { %1724 = vmatpush.msrb.mxu3 %v1708_v9 }
0x11b6   :  { %1666 = vmatpush.msrb.mxu1 %v1629_v57 }
0x11b7   :  { %1725 = vmatpush.msrb.mxu3 %v1707_v61 }
0x11b8   :  { %1667 = vmatpush.msrb.mxu1 %v1628_v34 }
0x11b9   :  { %1871 = vmatmul.msk.f32.vlgmr.msrb.gmra.mxu1 %vm224_vm9, %v1648_v33  ;;  %1726 = vmatpush.msrb.mxu3 %v1706_v43 }
0x11bb   :  { %1727 = vmatpush.msrb.mxu3 %v1705_v44 }
0x1236   :  { %v1669_v35 = vpop.f32.mrf.mxu1 }
0x1237   :  { %v1675_v36 = vsel %vm1674_vm1, %v1669_v35, 0.0 }
0x1238   :  { %1676 = vadd.xlane.f32.xlu2 %v1675_v36 }
0x12ab   :  { %v1677_v37 = vpop.xlane.xlu2 %1676 }
0x12ac   :  { %v1678_v38 = vmul.f32 %v1677_v37, %v2209_v10 }
0x12ae   :  { %v1679_v39 = vsub.f32 %v1669_v35, %v1678_v38 }
0x12b0   :  { %v1680_v40 = vmul.f32 %v1679_v39, %v1679_v39 }
0x12b2   :  { %v1681_v42 = vsel %vm1674_vm1, %v1680_v40, 0.0 }
0x12b3   :  { %1682 = vadd.xlane.f32.xlu0 %v1681_v42 }
0x1326   :  { %v1683_v45 = vpop.xlane.xlu0 %1682 }
0x1327   :  { %v1684_v46 = vmul.f32 %v1683_v45, %v2209_v10  ;;  %v1945_v10 = vld [vmem:[%s2696_s16] ss:$0 sm:$0xff]  ;;  %s1754_s16 = sshll.u32 %s2096_s15, 4  ;;  %s1755_s16 = int_to_ptr.vmem [resolvable:$true] %s1754_s16 }
0x1329   :  { %v1685_v48 = vadd.f32 1e-05, %v1684_v46 }
0x132b   :  { %2036 = vrsqrt.f32 %v1685_v48  ;;  %vm1692_vm7 = vweird.f32 %v1685_v48 }
0x1331   :  { %v2037_v49 = vpop.eup %2036 }
0x1332   :  { %v1687_v62 = vmul.f32 %v2037_v49, %v1685_v48  ;;  %vm1693_vm9 = vweird.f32 %v2037_v49 }
0x1333   :  { %vm1694_vm8 = vmor %vm1692_vm7, %vm1693_vm9 }
0x1334   :  { %v1688_v4 = vmul.f32 %v2037_v49, %v1687_v62 }
0x1336   :  { %v1689_v52 = vmul.f32 0.5, %v1688_v4 }
0x1338   :  { %v1690_v53 = vsub.f32 1.5, %v1689_v52 }
0x133a   :  { %v1691_v8 = vmul.f32 %v2037_v49, %v1690_v53 }
0x133c   :  { %v1695_v26 = vsel %vm1694_vm8, %v2037_v49, %v1691_v8 }
0x133d   :  { %v1696_v55 = vmul.f32 %v1695_v26, %v1679_v39 }
0x133f   :  { %v1700_v58 = vmul.f32 %v1944_v54, %v1696_v55 }
0x1341   :  { %v1704_v59 = vadd.f32 %v1945_v10, %v1700_v58 }
0x1343   :  { %1872 = vmatmul.msk.f32.vlgmr.msrb.gmra.mxu3 %vm79_vm0, %v1704_v59 }
0x13c6   :  { %v1729_v60 = vpop.f32.mrf.mxu3 }
0x13c7   :  { %v1732_v31 = vmul.f32 %v1729_v60, %v1729_v60 }
0x13c9   :  { %v1734_v63 = vsel %vm1733_vm10, %v1732_v31, 0.0 }
0x13ca   :  { %1735 = vadd.xlane.f32.xlu2 %v1734_v63 }
0x143d   :  { %v1736_v1 = vpop.xlane.xlu2 %1735 }
0x143e   :  { %2038 = vrsqrt.f32 %v1736_v1  ;;  %vm1743_vm12 = vweird.f32 %v1736_v1 }
0x1444   :  { %v2039_v3 = vpop.eup %2038 }
0x1445   :  { %v1738_v5 = vmul.f32 %v2039_v3, %v1736_v1  ;;  %vm1744_vm11 = vweird.f32 %v2039_v3 }
0x1446   :  { %vm1745_vm0 = vmor %vm1743_vm12, %vm1744_vm11 }
0x1447   :  { %v1739_v2 = vmul.f32 %v2039_v3, %v1738_v5 }
0x1449   :  { %v1740_v6 = vmul.f32 0.5, %v1739_v2 }
0x144b   :  { %v1741_v7 = vsub.f32 1.5, %v1740_v6 }
0x144d   :  { %v1742_v11 = vmul.f32 %v2039_v3, %v1741_v7 }
0x144f   :  { %v1746_v47 = vsel %vm1745_vm0, %v2039_v3, %v1742_v11 }
0x1450   :  { %v1747_v12 = vmul.f32 %v1746_v47, %v1729_v60 }
0x1452   :  { %1748 = vst.msk [vmem:[#allocation5] sm:$0x3] %vm1733_vm10, %v1747_v12 }
0x1453   :  { %1759 = dma.vmem_to_hbm [thread:$0]  %s1755_s16, 32, %s1757_s1, [#allocation3]  }
0x1454   :  { %2080 = dma.done.wait [#allocation3], 32  }
0x1455   :  { %2081 = vsyncadd [#allocation3], 4294967264 }
0x1456   :  { %1764 = vsyncpa [#allocation3], 1 }
0x1457   :  { %1765 = vsyncpa [#allocation4], 1 }

</bundles_post_ra>
